<compile_context>
chip_gen: v7x
topology: tpu7x:2x2x1
jax: 0.10.0
libtpu: 0.0.40
codegen_flags: <defaults>
</compile_context>

<pallas_src>
import functools

import jax
import jax.numpy as jnp
from jax import lax
from jax.experimental import pallas as pl
from jax.experimental.pallas import tpu as pltpu

KEHALF = 7.199822675975274  # kehalf_ase; default unit conversion factors are all 1.0


def _electrostatics_kernel(cutoff, cutoff_sr, r_rows,
                           packed_ref, out_ref, acc_ref):
    """One (R,128) pair tile: elementwise damped Coulomb + select/reduce scatter."""
    n_pad = acc_ref.shape[0]

    # Accumulator persists across the pair-tile (reduction) grid axis.
    @pl.when(pl.program_id(0) == 0)
    def _():
        acc_ref[...] = jnp.zeros_like(acc_ref)

    q_prod = packed_ref[0]            # (R, 128) f32: charges[idx_i] * charges[idx_j]
    d = packed_ref[1]                 # (R, 128) f32: pair distances
    ii = packed_ref[2]                # (R, 128) f32: idx_i stored exactly as floats

    # --- damped Coulomb potential (elementwise on full vregs) ----------------
    inv_dd = lax.rsqrt(d * d + 1.0)                    # 1/sqrt(d^2 + 1), full precision
    inv_d = pl.reciprocal(d, approx=True)              # 1/d on EUP
    inv_d = inv_d * (2.0 - d * inv_d)                  # one Newton step (load-bearing)

    x = d * (1.0 / cutoff_sr)
    x3 = x * x * x
    poly = 1.0 - x3 * (10.0 - x * (15.0 - 6.0 * x))    # Poly6 switch (Horner form)
    sw_damped = jnp.where(x < 1.0, poly, 0.0)
    sw_ordinary = 1.0 - sw_damped

    e_shift = d * (1.0 / (cutoff * cutoff)) - (2.0 / cutoff)  # 'force' truncation
    e = KEHALF * q_prod * (sw_damped * inv_dd + sw_ordinary * inv_d + e_shift)
    e = jnp.where(d <= cutoff, e, 0.0)                 # (R, 128)

    # --- scatter_sum(E, idx_i): MXU-free select + accumulate -----------------
    # atoms on sublanes, pairs stay in their lanes; padded pairs carry e == 0.
    ii_int = ii.astype(jnp.int32)
    iota_n = lax.broadcasted_iota(jnp.int32, (n_pad, 128), 0)   # atom id per sublane
    acc = acc_ref[...]
    for r in range(r_rows):                                      # static, unrolled
        acc = acc + jnp.where(iota_n == ii_int[r:r + 1, :], e[r:r + 1, :], 0.0)
    acc_ref[...] = acc

    # Final lane reduction exactly once: ones(1,128) @ acc(N_pad,128)^T keeps
    # the output lane-dense (1, N_pad) without a per-step transpose.
    @pl.when(pl.program_id(0) == pl.num_programs(0) - 1)
    def _():
        ones = jnp.ones((1, 128), jnp.float32)
        out_ref[...] = lax.dot_general(
            ones, acc_ref[...],
            dimension_numbers=(((1,), (1,)), ((), ())),
            preferred_element_type=jnp.float32)


def _round_up(v, m):
    return ((v + m - 1) // m) * m


def pc_damped_electrostatics(atomic_charges, distances, idx_i, idx_j,
                             cutoff, cutoff_short_range, p_tile=2048):
    """Wrapper: gathers charge products, packs/pads pair data, runs the kernel."""
    assert p_tile % 128 == 0
    n = atomic_charges.shape[0]
    p = distances.shape[0]
    r_rows = p_tile // 128
    n_pad = max(_round_up(n, 128), 128)
    p_pad = max(_round_up(p, p_tile), p_tile)
    r_total = p_pad // 128

    charges = atomic_charges.astype(jnp.float32)
    # Charge gather in XLA (a few KB) — the kernel only does the scatter.
    q_prod = charges[idx_i] * charges[idx_j]

    # Single packed slab -> one DMA per grid step.  Padded pairs get
    # q_prod = 0 AND d = 2*cutoff (masked in-kernel), idx = 0 (scatters zeros).
    qp_row = jnp.zeros((p_pad,), jnp.float32).at[:p].set(q_prod)
    d_row = jnp.full((p_pad,), 2.0 * float(cutoff), jnp.float32).at[:p].set(
        distances.astype(jnp.float32))
    ii_row = jnp.zeros((p_pad,), jnp.float32).at[:p].set(idx_i.astype(jnp.float32))
    packed = jnp.stack([qp_row, d_row, ii_row]).reshape(3, r_total, 128)

    kernel = functools.partial(
        _electrostatics_kernel, float(cutoff), float(cutoff_short_range), r_rows)

    out = pl.pallas_call(
        kernel,
        out_shape=jax.ShapeDtypeStruct((1, n_pad), jnp.float32),
        grid=(p_pad // p_tile,),
        in_specs=[pl.BlockSpec((3, r_rows, 128), lambda t: (0, t, 0))],
        out_specs=pl.BlockSpec((1, n_pad), lambda t: (0, 0)),       # resident output
        scratch_shapes=[pltpu.VMEM((n_pad, 128), jnp.float32)],     # scatter accumulator
        compiler_params=pltpu.CompilerParams(
            dimension_semantics=("arbitrary",)),
    )(packed)
    return out[0, :n]


def _reference(atomic_charges, distances, idx_i, idx_j, cutoff, cutoff_sr):
    """Pure-JAX reference mirroring the PyTorch module."""
    q_i = atomic_charges[idx_i]
    q_j = atomic_charges[idx_j]
    d_damped = jnp.sqrt(distances ** 2 + 1.0)
    x = distances / cutoff_sr
    sw_damped = jnp.where(
        x < 1.0, 1.0 - 6.0 * x ** 5 + 15.0 * x ** 4 - 10.0 * x ** 3, 0.0)
    sw_ordinary = 1.0 - sw_damped
    e_shift = distances / cutoff ** 2 - 2.0 / cutoff
    e = KEHALF * q_i * q_j * (sw_damped / d_damped
                              + sw_ordinary / distances
                              + e_shift)
    e = jnp.where(distances <= cutoff, e, jnp.zeros_like(e))
    return jax.ops.segment_sum(e, idx_i, num_segments=atomic_charges.shape[0])


if __name__ == "__main__":
    cutoff = 4.0
    cutoff_short_range = 2.0

    n_atoms = 8
    key = jax.random.PRNGKey(0)
    k1, k2, k3 = jax.random.split(key, 3)

    # deterministic synthetic system: charges + all ordered pairs i != j
    atomic_charges = jax.random.normal(k1, (n_atoms,), dtype=jnp.float32)
    positions = jax.random.uniform(k2, (n_atoms, 3), dtype=jnp.float32,
                                   minval=0.0, maxval=3.0)
    ii_full, jj_full = jnp.meshgrid(jnp.arange(n_atoms), jnp.arange(n_atoms),
                                    indexing="ij")
    mask = ii_full != jj_full
    idx_i = ii_full[mask].astype(jnp.int32)          # (56,)
    idx_j = jj_full[mask].astype(jnp.int32)          # (56,)
    distances = jnp.linalg.norm(positions[idx_i] - positions[idx_j], axis=-1)
    # distances strictly positive (i != j, random positions)

    out = pc_damped_electrostatics(atomic_charges, distances, idx_i, idx_j,
                                   cutoff, cutoff_short_range)
    out = jax.block_until_ready(out)

    ref = _reference(atomic_charges, distances, idx_i, idx_j,
                     cutoff, cutoff_short_range)
    ref = jax.block_until_ready(ref)

    assert out.shape == (n_atoms,)
    assert jnp.allclose(out, ref, rtol=1e-4, atol=1e-4), (out, ref)
    print("KERNEL_OK")
</pallas_src>

<mosaic_0001>
module attributes {stable_mosaic.version = 11 : i64} {
  func.func @_electrostatics_kernel(%arg0: i32, %arg1: memref<3x16x128xf32, #tpu.memory_space<vmem>>, %arg2: memref<1x128xf32, #tpu.memory_space<vmem>>, %arg3: memref<128x128xf32, #tpu.memory_space<vmem>>) attributes {dimension_semantics = [#tpu.dimension_semantics<arbitrary>], iteration_bounds = array<i64: 1>, scalar_prefetch = 0 : i64, scratch_operands = 1 : i64, tpu.core_type = #tpu.core_type<tc>, window_params = [{transform_indices = @transform_0, window_bounds = array<i64: 3, 16, 128>}, {pipeline_mode = #tpu.pipeline_mode<synchronous>, transform_indices = @transform_1, window_bounds = array<i64: 1, 128>}]} {
    %c0_i32 = arith.constant 0 : i32
    %0 = arith.cmpi eq, %arg0, %c0_i32 : i32
    %1 = arith.extui %0 : i1 to i32
    %c0_i32_0 = arith.constant 0 : i32
    %2 = arith.cmpi ne, %1, %c0_i32_0 : i32
    scf.if %2 {
      %cst_43 = arith.constant 0.000000e+00 : f32
      %204 = vector.broadcast %cst_43 : f32 to vector<128x128xf32>
      %c0_44 = arith.constant 0 : index
      %c0_45 = arith.constant 0 : index
      %205 = vector.load %arg3[%c0_44, %c0_45] : memref<128x128xf32, #tpu.memory_space<vmem>>, vector<128x128xf32>
      tpu.vector_store %arg3[%c0_44, %c0_45], %204 {strides = array<i32>} : memref<128x128xf32, #tpu.memory_space<vmem>>, vector<128x128xf32>,
    } else {
    }
    %c0 = arith.constant 0 : index
    %c0_1 = arith.constant 0 : index
    %c0_2 = arith.constant 0 : index
    %3 = vector.load %arg1[%c0, %c0_1, %c0_2] : memref<3x16x128xf32, #tpu.memory_space<vmem>>, vector<1x16x128xf32>
    %4 = vector.shape_cast %3 : vector<1x16x128xf32> to vector<16x128xf32>
    %c1 = arith.constant 1 : index
    %c0_3 = arith.constant 0 : index
    %c0_4 = arith.constant 0 : index
    %5 = vector.load %arg1[%c1, %c0_3, %c0_4] : memref<3x16x128xf32, #tpu.memory_space<vmem>>, vector<1x16x128xf32>
    %6 = vector.shape_cast %5 : vector<1x16x128xf32> to vector<16x128xf32>
    %c2 = arith.constant 2 : index
    %c0_5 = arith.constant 0 : index
    %c0_6 = arith.constant 0 : index
    %7 = vector.load %arg1[%c2, %c0_5, %c0_6] : memref<3x16x128xf32, #tpu.memory_space<vmem>>, vector<1x16x128xf32>
    %8 = vector.shape_cast %7 : vector<1x16x128xf32> to vector<16x128xf32>
    %9 = arith.mulf %6, %6 : vector<16x128xf32>
    %cst = arith.constant 1.000000e+00 : f32
    %10 = vector.broadcast %cst : f32 to vector<16x128xf32>
    %11 = arith.addf %9, %10 : vector<16x128xf32>
    %12 = math.rsqrt %11 : vector<16x128xf32>
    %13 = tpu.reciprocal %6 {approx = true} : vector<16x128xf32> -> vector<16x128xf32>
    %14 = arith.mulf %6, %13 : vector<16x128xf32>
    %cst_7 = arith.constant 2.000000e+00 : f32
    %15 = vector.broadcast %cst_7 : f32 to vector<16x128xf32>
    %16 = arith.subf %15, %14 : vector<16x128xf32>
    %17 = arith.mulf %13, %16 : vector<16x128xf32>
    %cst_8 = arith.constant 5.000000e-01 : f32
    %18 = vector.broadcast %cst_8 : f32 to vector<16x128xf32>
    %19 = arith.mulf %6, %18 : vector<16x128xf32>
    %20 = arith.mulf %19, %19 : vector<16x128xf32>
    %21 = arith.mulf %20, %19 : vector<16x128xf32>
    %cst_9 = arith.constant 6.000000e+00 : f32
    %22 = vector.broadcast %cst_9 : f32 to vector<16x128xf32>
    %23 = arith.mulf %22, %19 : vector<16x128xf32>
    %cst_10 = arith.constant 1.500000e+01 : f32
    %24 = vector.broadcast %cst_10 : f32 to vector<16x128xf32>
    %25 = arith.subf %24, %23 : vector<16x128xf32>
    %26 = arith.mulf %19, %25 : vector<16x128xf32>
    %cst_11 = arith.constant 1.000000e+01 : f32
    %27 = vector.broadcast %cst_11 : f32 to vector<16x128xf32>
    %28 = arith.subf %27, %26 : vector<16x128xf32>
    %29 = arith.mulf %21, %28 : vector<16x128xf32>
    %cst_12 = arith.constant 1.000000e+00 : f32
    %30 = vector.broadcast %cst_12 : f32 to vector<16x128xf32>
    %31 = arith.subf %30, %29 : vector<16x128xf32>
    %cst_13 = arith.constant 1.000000e+00 : f32
    %32 = vector.broadcast %cst_13 : f32 to vector<16x128xf32>
    %33 = arith.cmpf olt, %19, %32 : vector<16x128xf32>
    %cst_14 = arith.constant 0.000000e+00 : f32
    %34 = vector.broadcast %cst_14 : f32 to vector<16x128xf32>
    %35 = arith.select %33, %31, %34 : vector<16x128xi1>, vector<16x128xf32>
    %cst_15 = arith.constant 1.000000e+00 : f32
    %36 = vector.broadcast %cst_15 : f32 to vector<16x128xf32>
    %37 = arith.subf %36, %35 : vector<16x128xf32>
    %cst_16 = arith.constant 6.250000e-02 : f32
    %38 = vector.broadcast %cst_16 : f32 to vector<16x128xf32>
    %39 = arith.mulf %6, %38 : vector<16x128xf32>
    %cst_17 = arith.constant 5.000000e-01 : f32
    %40 = vector.broadcast %cst_17 : f32 to vector<16x128xf32>
    %41 = arith.subf %39, %40 : vector<16x128xf32>
    %cst_18 = arith.constant 7.1998229 : f32
    %42 = vector.broadcast %cst_18 : f32 to vector<16x128xf32>
    %43 = arith.mulf %42, %4 : vector<16x128xf32>
    %44 = arith.mulf %35, %12 : vector<16x128xf32>
    %45 = arith.mulf %37, %17 : vector<16x128xf32>
    %46 = arith.addf %44, %45 : vector<16x128xf32>
    %47 = arith.addf %46, %41 : vector<16x128xf32>
    %48 = arith.mulf %43, %47 : vector<16x128xf32>
    %cst_19 = arith.constant 4.000000e+00 : f32
    %49 = vector.broadcast %cst_19 : f32 to vector<16x128xf32>
    %50 = arith.cmpf ole, %6, %49 : vector<16x128xf32>
    %cst_20 = arith.constant 0.000000e+00 : f32
    %51 = vector.broadcast %cst_20 : f32 to vector<16x128xf32>
    %52 = arith.select %50, %48, %51 : vector<16x128xi1>, vector<16x128xf32>
    %53 = arith.fptosi %8 : vector<16x128xf32> to vector<16x128xi32>
    %54 = tpu.iota {dimensions = array<i32: 0>} : vector<128x128xi32>
    %c0_21 = arith.constant 0 : index
    %c0_22 = arith.constant 0 : index
    %55 = vector.load %arg3[%c0_21, %c0_22] : memref<128x128xf32, #tpu.memory_space<vmem>>, vector<128x128xf32>
    %56 = vector.extract_strided_slice %53 {offsets = [0, 0], sizes = [1, 128], strides = [1, 1]} : vector<16x128xi32> to vector<1x128xi32>
    %57 = vector.broadcast %56 : vector<1x128xi32> to vector<128x128xi32>
    %58 = arith.cmpi eq, %54, %57 : vector<128x128xi32>
    %59 = vector.extract_strided_slice %52 {offsets = [0, 0], sizes = [1, 128], strides = [1, 1]} : vector<16x128xf32> to vector<1x128xf32>
    %cst_23 = arith.constant 0.000000e+00 : f32
    %60 = vector.shape_cast %59 : vector<1x128xf32> to vector<1x128xf32>
    %61 = vector.broadcast %60 : vector<1x128xf32> to vector<128x128xf32>
    %62 = vector.broadcast %cst_23 : f32 to vector<128x128xf32>
    %63 = arith.select %58, %61, %62 : vector<128x128xi1>, vector<128x128xf32>
    %64 = arith.addf %55, %63 : vector<128x128xf32>
    %65 = vector.extract_strided_slice %53 {offsets = [1, 0], sizes = [1, 128], strides = [1, 1]} : vector<16x128xi32> to vector<1x128xi32>
    %66 = vector.broadcast %65 : vector<1x128xi32> to vector<128x128xi32>
    %67 = arith.cmpi eq, %54, %66 : vector<128x128xi32>
    %68 = vector.extract_strided_slice %52 {offsets = [1, 0], sizes = [1, 128], strides = [1, 1]} : vector<16x128xf32> to vector<1x128xf32>
    %cst_24 = arith.constant 0.000000e+00 : f32
    %69 = vector.shape_cast %68 : vector<1x128xf32> to vector<1x128xf32>
    %70 = vector.broadcast %69 : vector<1x128xf32> to vector<128x128xf32>
    %71 = vector.broadcast %cst_24 : f32 to vector<128x128xf32>
    %72 = arith.select %67, %70, %71 : vector<128x128xi1>, vector<128x128xf32>
    %73 = arith.addf %64, %72 : vector<128x128xf32>
    %74 = vector.extract_strided_slice %53 {offsets = [2, 0], sizes = [1, 128], strides = [1, 1]} : vector<16x128xi32> to vector<1x128xi32>
    %75 = vector.broadcast %74 : vector<1x128xi32> to vector<128x128xi32>
    %76 = arith.cmpi eq, %54, %75 : vector<128x128xi32>
    %77 = vector.extract_strided_slice %52 {offsets = [2, 0], sizes = [1, 128], strides = [1, 1]} : vector<16x128xf32> to vector<1x128xf32>
    %cst_25 = arith.constant 0.000000e+00 : f32
    %78 = vector.shape_cast %77 : vector<1x128xf32> to vector<1x128xf32>
    %79 = vector.broadcast %78 : vector<1x128xf32> to vector<128x128xf32>
    %80 = vector.broadcast %cst_25 : f32 to vector<128x128xf32>
    %81 = arith.select %76, %79, %80 : vector<128x128xi1>, vector<128x128xf32>
    %82 = arith.addf %73, %81 : vector<128x128xf32>
    %83 = vector.extract_strided_slice %53 {offsets = [3, 0], sizes = [1, 128], strides = [1, 1]} : vector<16x128xi32> to vector<1x128xi32>
    %84 = vector.broadcast %83 : vector<1x128xi32> to vector<128x128xi32>
    %85 = arith.cmpi eq, %54, %84 : vector<128x128xi32>
    %86 = vector.extract_strided_slice %52 {offsets = [3, 0], sizes = [1, 128], strides = [1, 1]} : vector<16x128xf32> to vector<1x128xf32>
    %cst_26 = arith.constant 0.000000e+00 : f32
    %87 = vector.shape_cast %86 : vector<1x128xf32> to vector<1x128xf32>
    %88 = vector.broadcast %87 : vector<1x128xf32> to vector<128x128xf32>
    %89 = vector.broadcast %cst_26 : f32 to vector<128x128xf32>
    %90 = arith.select %85, %88, %89 : vector<128x128xi1>, vector<128x128xf32>
    %91 = arith.addf %82, %90 : vector<128x128xf32>
    %92 = vector.extract_strided_slice %53 {offsets = [4, 0], sizes = [1, 128], strides = [1, 1]} : vector<16x128xi32> to vector<1x128xi32>
    %93 = vector.broadcast %92 : vector<1x128xi32> to vector<128x128xi32>
    %94 = arith.cmpi eq, %54, %93 : vector<128x128xi32>
    %95 = vector.extract_strided_slice %52 {offsets = [4, 0], sizes = [1, 128], strides = [1, 1]} : vector<16x128xf32> to vector<1x128xf32>
    %cst_27 = arith.constant 0.000000e+00 : f32
    %96 = vector.shape_cast %95 : vector<1x128xf32> to vector<1x128xf32>
    %97 = vector.broadcast %96 : vector<1x128xf32> to vector<128x128xf32>
    %98 = vector.broadcast %cst_27 : f32 to vector<128x128xf32>
    %99 = arith.select %94, %97, %98 : vector<128x128xi1>, vector<128x128xf32>
    %100 = arith.addf %91, %99 : vector<128x128xf32>
    %101 = vector.extract_strided_slice %53 {offsets = [5, 0], sizes = [1, 128], strides = [1, 1]} : vector<16x128xi32> to vector<1x128xi32>
    %102 = vector.broadcast %101 : vector<1x128xi32> to vector<128x128xi32>
    %103 = arith.cmpi eq, %54, %102 : vector<128x128xi32>
    %104 = vector.extract_strided_slice %52 {offsets = [5, 0], sizes = [1, 128], strides = [1, 1]} : vector<16x128xf32> to vector<1x128xf32>
    %cst_28 = arith.constant 0.000000e+00 : f32
    %105 = vector.shape_cast %104 : vector<1x128xf32> to vector<1x128xf32>
    %106 = vector.broadcast %105 : vector<1x128xf32> to vector<128x128xf32>
    %107 = vector.broadcast %cst_28 : f32 to vector<128x128xf32>
    %108 = arith.select %103, %106, %107 : vector<128x128xi1>, vector<128x128xf32>
    %109 = arith.addf %100, %108 : vector<128x128xf32>
    %110 = vector.extract_strided_slice %53 {offsets = [6, 0], sizes = [1, 128], strides = [1, 1]} : vector<16x128xi32> to vector<1x128xi32>
    %111 = vector.broadcast %110 : vector<1x128xi32> to vector<128x128xi32>
    %112 = arith.cmpi eq, %54, %111 : vector<128x128xi32>
    %113 = vector.extract_strided_slice %52 {offsets = [6, 0], sizes = [1, 128], strides = [1, 1]} : vector<16x128xf32> to vector<1x128xf32>
    %cst_29 = arith.constant 0.000000e+00 : f32
    %114 = vector.shape_cast %113 : vector<1x128xf32> to vector<1x128xf32>
    %115 = vector.broadcast %114 : vector<1x128xf32> to vector<128x128xf32>
    %116 = vector.broadcast %cst_29 : f32 to vector<128x128xf32>
    %117 = arith.select %112, %115, %116 : vector<128x128xi1>, vector<128x128xf32>
    %118 = arith.addf %109, %117 : vector<128x128xf32>
    %119 = vector.extract_strided_slice %53 {offsets = [7, 0], sizes = [1, 128], strides = [1, 1]} : vector<16x128xi32> to vector<1x128xi32>
    %120 = vector.broadcast %119 : vector<1x128xi32> to vector<128x128xi32>
    %121 = arith.cmpi eq, %54, %120 : vector<128x128xi32>
    %122 = vector.extract_strided_slice %52 {offsets = [7, 0], sizes = [1, 128], strides = [1, 1]} : vector<16x128xf32> to vector<1x128xf32>
    %cst_30 = arith.constant 0.000000e+00 : f32
    %123 = vector.shape_cast %122 : vector<1x128xf32> to vector<1x128xf32>
    %124 = vector.broadcast %123 : vector<1x128xf32> to vector<128x128xf32>
    %125 = vector.broadcast %cst_30 : f32 to vector<128x128xf32>
    %126 = arith.select %121, %124, %125 : vector<128x128xi1>, vector<128x128xf32>
    %127 = arith.addf %118, %126 : vector<128x128xf32>
    %128 = vector.extract_strided_slice %53 {offsets = [8, 0], sizes = [1, 128], strides = [1, 1]} : vector<16x128xi32> to vector<1x128xi32>
    %129 = vector.broadcast %128 : vector<1x128xi32> to vector<128x128xi32>
    %130 = arith.cmpi eq, %54, %129 : vector<128x128xi32>
    %131 = vector.extract_strided_slice %52 {offsets = [8, 0], sizes = [1, 128], strides = [1, 1]} : vector<16x128xf32> to vector<1x128xf32>
    %cst_31 = arith.constant 0.000000e+00 : f32
    %132 = vector.shape_cast %131 : vector<1x128xf32> to vector<1x128xf32>
    %133 = vector.broadcast %132 : vector<1x128xf32> to vector<128x128xf32>
    %134 = vector.broadcast %cst_31 : f32 to vector<128x128xf32>
    %135 = arith.select %130, %133, %134 : vector<128x128xi1>, vector<128x128xf32>
    %136 = arith.addf %127, %135 : vector<128x128xf32>
    %137 = vector.extract_strided_slice %53 {offsets = [9, 0], sizes = [1, 128], strides = [1, 1]} : vector<16x128xi32> to vector<1x128xi32>
    %138 = vector.broadcast %137 : vector<1x128xi32> to vector<128x128xi32>
    %139 = arith.cmpi eq, %54, %138 : vector<128x128xi32>
    %140 = vector.extract_strided_slice %52 {offsets = [9, 0], sizes = [1, 128], strides = [1, 1]} : vector<16x128xf32> to vector<1x128xf32>
    %cst_32 = arith.constant 0.000000e+00 : f32
    %141 = vector.shape_cast %140 : vector<1x128xf32> to vector<1x128xf32>
    %142 = vector.broadcast %141 : vector<1x128xf32> to vector<128x128xf32>
    %143 = vector.broadcast %cst_32 : f32 to vector<128x128xf32>
    %144 = arith.select %139, %142, %143 : vector<128x128xi1>, vector<128x128xf32>
    %145 = arith.addf %136, %144 : vector<128x128xf32>
    %146 = vector.extract_strided_slice %53 {offsets = [10, 0], sizes = [1, 128], strides = [1, 1]} : vector<16x128xi32> to vector<1x128xi32>
    %147 = vector.broadcast %146 : vector<1x128xi32> to vector<128x128xi32>
    %148 = arith.cmpi eq, %54, %147 : vector<128x128xi32>
    %149 = vector.extract_strided_slice %52 {offsets = [10, 0], sizes = [1, 128], strides = [1, 1]} : vector<16x128xf32> to vector<1x128xf32>
    %cst_33 = arith.constant 0.000000e+00 : f32
    %150 = vector.shape_cast %149 : vector<1x128xf32> to vector<1x128xf32>
    %151 = vector.broadcast %150 : vector<1x128xf32> to vector<128x128xf32>
    %152 = vector.broadcast %cst_33 : f32 to vector<128x128xf32>
    %153 = arith.select %148, %151, %152 : vector<128x128xi1>, vector<128x128xf32>
    %154 = arith.addf %145, %153 : vector<128x128xf32>
    %155 = vector.extract_strided_slice %53 {offsets = [11, 0], sizes = [1, 128], strides = [1, 1]} : vector<16x128xi32> to vector<1x128xi32>
    %156 = vector.broadcast %155 : vector<1x128xi32> to vector<128x128xi32>
    %157 = arith.cmpi eq, %54, %156 : vector<128x128xi32>
    %158 = vector.extract_strided_slice %52 {offsets = [11, 0], sizes = [1, 128], strides = [1, 1]} : vector<16x128xf32> to vector<1x128xf32>
    %cst_34 = arith.constant 0.000000e+00 : f32
    %159 = vector.shape_cast %158 : vector<1x128xf32> to vector<1x128xf32>
    %160 = vector.broadcast %159 : vector<1x128xf32> to vector<128x128xf32>
    %161 = vector.broadcast %cst_34 : f32 to vector<128x128xf32>
    %162 = arith.select %157, %160, %161 : vector<128x128xi1>, vector<128x128xf32>
    %163 = arith.addf %154, %162 : vector<128x128xf32>
    %164 = vector.extract_strided_slice %53 {offsets = [12, 0], sizes = [1, 128], strides = [1, 1]} : vector<16x128xi32> to vector<1x128xi32>
    %165 = vector.broadcast %164 : vector<1x128xi32> to vector<128x128xi32>
    %166 = arith.cmpi eq, %54, %165 : vector<128x128xi32>
    %167 = vector.extract_strided_slice %52 {offsets = [12, 0], sizes = [1, 128], strides = [1, 1]} : vector<16x128xf32> to vector<1x128xf32>
    %cst_35 = arith.constant 0.000000e+00 : f32
    %168 = vector.shape_cast %167 : vector<1x128xf32> to vector<1x128xf32>
    %169 = vector.broadcast %168 : vector<1x128xf32> to vector<128x128xf32>
    %170 = vector.broadcast %cst_35 : f32 to vector<128x128xf32>
    %171 = arith.select %166, %169, %170 : vector<128x128xi1>, vector<128x128xf32>
    %172 = arith.addf %163, %171 : vector<128x128xf32>
    %173 = vector.extract_strided_slice %53 {offsets = [13, 0], sizes = [1, 128], strides = [1, 1]} : vector<16x128xi32> to vector<1x128xi32>
    %174 = vector.broadcast %173 : vector<1x128xi32> to vector<128x128xi32>
    %175 = arith.cmpi eq, %54, %174 : vector<128x128xi32>
    %176 = vector.extract_strided_slice %52 {offsets = [13, 0], sizes = [1, 128], strides = [1, 1]} : vector<16x128xf32> to vector<1x128xf32>
    %cst_36 = arith.constant 0.000000e+00 : f32
    %177 = vector.shape_cast %176 : vector<1x128xf32> to vector<1x128xf32>
    %178 = vector.broadcast %177 : vector<1x128xf32> to vector<128x128xf32>
    %179 = vector.broadcast %cst_36 : f32 to vector<128x128xf32>
    %180 = arith.select %175, %178, %179 : vector<128x128xi1>, vector<128x128xf32>
    %181 = arith.addf %172, %180 : vector<128x128xf32>
    %182 = vector.extract_strided_slice %53 {offsets = [14, 0], sizes = [1, 128], strides = [1, 1]} : vector<16x128xi32> to vector<1x128xi32>
    %183 = vector.broadcast %182 : vector<1x128xi32> to vector<128x128xi32>
    %184 = arith.cmpi eq, %54, %183 : vector<128x128xi32>
    %185 = vector.extract_strided_slice %52 {offsets = [14, 0], sizes = [1, 128], strides = [1, 1]} : vector<16x128xf32> to vector<1x128xf32>
    %cst_37 = arith.constant 0.000000e+00 : f32
    %186 = vector.shape_cast %185 : vector<1x128xf32> to vector<1x128xf32>
    %187 = vector.broadcast %186 : vector<1x128xf32> to vector<128x128xf32>
    %188 = vector.broadcast %cst_37 : f32 to vector<128x128xf32>
    %189 = arith.select %184, %187, %188 : vector<128x128xi1>, vector<128x128xf32>
    %190 = arith.addf %181, %189 : vector<128x128xf32>
    %191 = vector.extract_strided_slice %53 {offsets = [15, 0], sizes = [1, 128], strides = [1, 1]} : vector<16x128xi32> to vector<1x128xi32>
    %192 = vector.broadcast %191 : vector<1x128xi32> to vector<128x128xi32>
    %193 = arith.cmpi eq, %54, %192 : vector<128x128xi32>
    %194 = vector.extract_strided_slice %52 {offsets = [15, 0], sizes = [1, 128], strides = [1, 1]} : vector<16x128xf32> to vector<1x128xf32>
    %cst_38 = arith.constant 0.000000e+00 : f32
    %195 = vector.shape_cast %194 : vector<1x128xf32> to vector<1x128xf32>
    %196 = vector.broadcast %195 : vector<1x128xf32> to vector<128x128xf32>
    %197 = vector.broadcast %cst_38 : f32 to vector<128x128xf32>
    %198 = arith.select %193, %196, %197 : vector<128x128xi1>, vector<128x128xf32>
    %199 = arith.addf %190, %198 : vector<128x128xf32>
    %c0_39 = arith.constant 0 : index
    %c0_40 = arith.constant 0 : index
    %200 = vector.load %arg3[%c0_39, %c0_40] : memref<128x128xf32, #tpu.memory_space<vmem>>, vector<128x128xf32>
    tpu.vector_store %arg3[%c0_39, %c0_40], %199 {strides = array<i32>} : memref<128x128xf32, #tpu.memory_space<vmem>>, vector<128x128xf32>,
    %c0_i32_41 = arith.constant 0 : i32
    %201 = arith.cmpi eq, %arg0, %c0_i32_41 : i32
    %202 = arith.extui %201 : i1 to i32
    %c0_i32_42 = arith.constant 0 : i32
    %203 = arith.cmpi ne, %202, %c0_i32_42 : i32
    scf.if %203 {
      %cst_43 = arith.constant 1.000000e+00 : f32
      %204 = vector.broadcast %cst_43 : f32 to vector<1x128xf32>
      %c0_44 = arith.constant 0 : index
      %c0_45 = arith.constant 0 : index
      %205 = vector.load %arg3[%c0_44, %c0_45] : memref<128x128xf32, #tpu.memory_space<vmem>>, vector<128x128xf32>
      %cst_46 = arith.constant dense<0.000000e+00> : vector<1x128xf32>
      %206 = tpu.matmul %204, %205, %cst_46 {dimension_numbers = #tpu.dot_dimension_numbers<[1], [1], [0], [0], [0, 0, 1, 0], [], []>} : vector<1x128xf32>, vector<128x128xf32>, vector<1x128xf32> -> vector<1x128xf32>
      %c0_47 = arith.constant 0 : index
      %c0_48 = arith.constant 0 : index
      %207 = vector.load %arg2[%c0_47, %c0_48] : memref<1x128xf32, #tpu.memory_space<vmem>>, vector<1x128xf32>
      tpu.vector_store %arg2[%c0_47, %c0_48], %206 {strides = array<i32>} : memref<1x128xf32, #tpu.memory_space<vmem>>, vector<1x128xf32>,
    } else {
    }
    return
  }
  func.func @transform_0(%arg0: i32) -> (i32, i32, i32) {
    %c0_i32 = arith.constant 0 : i32
    %c0_i32_0 = arith.constant 0 : i32
    %c0_i32_1 = arith.constant 0 : i32
    return %c0_i32, %arg0, %c0_i32_0 : i32, i32, i32
  }
  func.func @transform_1(%arg0: i32) -> (i32, i32) {
    %c0_i32 = arith.constant 0 : i32
    %c0_i32_0 = arith.constant 0 : i32
    %c0_i32_1 = arith.constant 0 : i32
    return %c0_i32, %c0_i32_0 : i32, i32
  }
}

</mosaic_0001>

<bundles_post_ra>
// kernel: tpu_custom_call.1
= control target key start
LH: loop header
LB: loop body
LE: loop exit
PB: predicated region body
PF: predicated region fallthrough
CT: control target
= control target key end

     0   :  { %6 = vsyncpa [#allocation4], 0  ;;  %s2394_s0 = inlined_call_operand.hbm [shape: f32[3,16,128], index: 0, kind: input, shape index: {}]   ;;  %s2395_s1 = inlined_call_operand.hbm [shape: f32[1,128], index: 1, kind: output, shape index: {}]  }
   0x1   :  { %7 = vsyncpa [#allocation5], 0  ;;  %s1307_s6 = smov [#allocation3]   ;;  %s1259_s10 = scalar_lea.hbm %s2394_s0, 768 }
   0x2   :  { %s13_s7 = sshll.u32 %s1307_s6, 4  ;;  %p1260_p0 = scmp.ne.s32.totalorder %s2394_s0, %s1259_s10  ;;  %s14_s7 = int_to_ptr.vmem [resolvable:$true] %s13_s7 }
   0x3   :  { %p1263_p1 = scmp.lt.u32.totalorder %s1259_s10, %s2394_s0 }
   0x5   :  { %p1265_p2 = pnand %p1263_p1, %p1260_p0 }
   0x7   :  { %1268 = shalt.err (!%p1265_p2)
}
   0x8   :  { %s1269_s15 = scalar_lea.vmem %s14_s7, 768  ;;  %p1274_p4 = scmp.lt.s32.totalorder %s14_s7, %s14_s7 }
   0x9   :  { %p1270_p3 = scmp.ne.s32.totalorder %s14_s7, %s1269_s15  ;;  %p1275_p5 = scmp.lt.s32.totalorder %s1269_s15, %s1269_s15 }
   0xb   :  { %p1276_p6 = por %p1275_p5, %p1274_p4 }
   0xd   :  { %p1277_p7 = pnand %p1276_p6, %p1270_p3 }
   0xf   :  { %1280 = shalt.err (!%p1277_p7)
}
  0x10   :  { %s1308_s16 = smov 128   ;;  %s1309_s17 = smov 8  }
  0x11   :  { %19 = dma.hbm_to_vmem [thread:$0]  %s2394_s0, 768, %s14_s7, [#allocation4], %s1308_s16, %s1308_s16, %s1309_s17  }
  0x12   :  { %1303 = dma.done.wait [#allocation4], 768  }
  0x13   :  { %1304 = vsyncadd [#allocation4], 4294966528  ;;  %v111_v0 = vlaneseq  ;;  %v2396_v1 = vmov 0.0|0.0   ;;  %v1343_v4 = vld [vmem:[#allocation3 + $0x10] sm:$0xff]  ;;  %v1357_v9 = vld [vmem:[#allocation3 + $0x18] sm:$0xff]  ;;  %s1314_s0 = smov [#allocation6]  }
  0x14   :  { %1215 = vmatprep.subr.bf16.mxu0 %v2396_v1  ;;  %v51_v10 = vmul.f32 %v1343_v4, %v1343_v4  ;;  %1251 = vrcp.f32 %v1343_v4  ;;  %v1363_v11 = vmul.f32 0.5, %v1343_v4  ;;  %v52_v13 = vmul.f32 %v1357_v9, %v1357_v9  ;;  %v49_v24 = vld [vmem:[#allocation3 + $0x20] sm:$0xff]  ;;  %v50_v28 = vld [vmem:[#allocation3 + $0x28] sm:$0xff]  ;;  %s1152_s20 = sshll.u32 %s1314_s0, 4  ;;  %s1153_s20 = int_to_ptr.vmem [resolvable:$true] %s1152_s20 }
  0x15   :  { %v1338_v2 = vshrl.u32 %v111_v0, 7  ;;  %1253 = vrcp.f32 %v1357_v9  ;;  %v1372_v14 = vmul.f32 0.5, %v1357_v9  ;;  %v89_v30 = vmul.f32 0.0625, %v1343_v4  ;;  %v43_v36 = vld [vmem:[#allocation3] sm:$0xff]  ;;  %v44_v37 = vld [vmem:[#allocation3 + $0x8] sm:$0xff]  ;;  %s1281_s21 = scalar_lea.vmem %s1153_s20, 16  ;;  %p1286_p9 = scmp.lt.s32.totalorder %s1153_s20, %s1153_s20 }
  0x16   :  { %v53_v16 = vadd.f32 1.0, %v51_v10  ;;  %v67_v17 = vmul.f32 %v1363_v11, %v1363_v11  ;;  %v71_v18 = vmul.f32 6.0, %v1363_v11  ;;  %v54_v20 = vadd.f32 1.0, %v52_v13  ;;  %p1282_p8 = scmp.ne.s32.totalorder %s1153_s20, %s1281_s21  ;;  %s1285_s22 = scalar_lea.vmem %s1153_s20, 32 }
  0x17   :  { %2406 = vst [vmem:[#allocation9_spill] sm:$0xff] %v1338_v2  ;;  %v1341_v3 = vsub.s32 0, %v1338_v2  ;;  %v1346_v5 = vsub.s32 1, %v1338_v2  ;;  %v1349_v6 = vsub.s32 2, %v1338_v2  ;;  %v1352_v7 = vsub.s32 3, %v1338_v2  ;;  %p1287_p10 = scmp.lt.s32.totalorder %s1285_s22, %s1281_s21 }
  0x18   :  { %v1355_v8 = vsub.s32 4, %v1338_v2  ;;  %v1366_v12 = vsub.s32 5, %v1338_v2  ;;  %v1375_v15 = vsub.s32 6, %v1338_v2  ;;  %v1381_v19 = vsub.s32 7, %v1338_v2 }
  0x19   :  { %v68_v21 = vmul.f32 %v1372_v14, %v1372_v14  ;;  %v72_v22 = vmul.f32 6.0, %v1372_v14  ;;  %v1387_v23 = vadd.s32 8, %v1338_v2  ;;  %1255 = vrsqrt.f32 %v53_v16  ;;  %p1288_p11 = por %p1287_p10, %p1286_p9 }
  0x1a   :  { %v73_v25 = vsub.f32 15.0, %v71_v18  ;;  %v1390_v26 = vadd.s32 16, %v1338_v2  ;;  %v1393_v27 = vadd.s32 24, %v1338_v2  ;;  %1257 = vrsqrt.f32 %v54_v20 }
  0x1b   :  { %v74_v29 = vsub.f32 15.0, %v72_v22  ;;  %v1397_v31 = vadd.s32 32, %v1338_v2  ;;  %v69_v32 = vmul.f32 %v67_v17, %v1363_v11  ;;  %v90_v34 = vmul.f32 0.0625, %v1357_v9  ;;  %p1289_p12 = pnand %p1288_p11, %p1282_p8 }
  0x1c   :  { %v75_v33 = vmul.f32 %v73_v25, %v1363_v11  ;;  %v1403_v35 = vadd.s32 40, %v1338_v2  ;;  %v70_v38 = vmul.f32 %v68_v21, %v1372_v14  ;;  %v1239_v40 = vtrunc.f32 %v49_v24 }
  0x1d   :  { %v76_v39 = vmul.f32 %v74_v29, %v1372_v14  ;;  %v1408_v41 = vadd.s32 48, %v1338_v2  ;;  %vm83_vm0 = vcmp.lt.f32.partialorder %v1363_v11, 1.0  ;;  %v1241_v43 = vtrunc.f32 %v50_v28 }
  0x1e   :  { %v77_v42 = vsub.f32 10.0, %v75_v33  ;;  %v1412_v44 = vadd.s32 56, %v1338_v2  ;;  %vm84_vm1 = vcmp.lt.f32.partialorder %v1372_v14, 1.0  ;;  %v1161_v46 = vadd.f32 -0.5, %v89_v30  ;;  %v1252_v48 = vpop.eup %1251 }
  0x1f   :  { %2407 = vst [vmem:[#allocation10_spill] sm:$0xff] %v1408_v41  ;;  %v78_v45 = vsub.f32 10.0, %v76_v39  ;;  %v1240_v47 = vcvt.f32.s32 %v1239_v40  ;;  %v1162_v50 = vadd.f32 -0.5, %v90_v34  ;;  %v93_v51 = vmul.f32 7.199823, %v43_v36  ;;  %v1254_v53 = vpop.eup %1253 }
  0x20   :  { %2408 = vst [vmem:[#allocation11_spill] sm:$0xff] %v1412_v44  ;;  %v79_v49 = vmul.f32 %v77_v42, %v69_v32  ;;  %v94_v52 = vmul.f32 7.199823, %v44_v37  ;;  %v59_v54 = vmul.f32 %v1252_v48, %v1343_v4  ;;  %v1417_v56 = vadd.s32 64, %v1338_v2 }
  0x21   :  { %v80_v55 = vmul.f32 %v78_v45, %v70_v38  ;;  %v1420_v57 = vadd.s32 72, %v1338_v2  ;;  %v60_v58 = vmul.f32 %v1254_v53, %v1357_v9  ;;  %v1242_v60 = vcvt.f32.s32 %v1241_v43 }
  0x22   :  { %2409 = vst [vmem:[#allocation12_spill] sm:$0xff] %v1417_v56  ;;  %v81_v59 = vsub.f32 1.0, %v79_v49  ;;  %v1424_v61 = vadd.s32 80, %v1338_v2  ;;  %v61_v62 = vsub.f32 2.0, %v59_v54  ;;  %v1427_v0 = vrot.slane %v1240_v47, %v1341_v3 }
  0x23   :  { %2410 = vst [vmem:[#allocation13_spill] sm:$0xff] %v1420_v57  ;;  %v82_v63 = vsub.f32 1.0, %v80_v55  ;;  %v1430_v10 = vadd.s32 88, %v1338_v2  ;;  %v1256_v13 = vpop.eup %1255  ;;  %v62_v16 = vsub.f32 2.0, %v60_v58  ;;  %vm105_vm2 = vcmp.le.f32.partialorder %v1343_v4, 4.0 }
  0x24   :  { %2411 = vst [vmem:[#allocation14_spill] sm:$0xff] %v1424_v61  ;;  %v85_v17 = vsel %vm83_vm0, %v81_v59, 0.0  ;;  %v1436_v18 = vrot.slane %v1240_v47, %v1346_v5  ;;  %v1439_v20 = vrot.slane %v1240_v47, %v1349_v6  ;;  %v1258_v21 = vpop.eup %1257  ;;  %v63_v22 = vmul.f32 %v1252_v48, %v61_v62 }
  0x25   :  { %2412 = vst [vmem:[#allocation15_spill] sm:$0xff] %v1430_v10  ;;  %v86_v24 = vsel %vm84_vm1, %v82_v63, 0.0  ;;  %v87_v25 = vsub.f32 1.0, %v85_v17  ;;  %v95_v28 = vmul.f32 %v1256_v13, %v85_v17  ;;  %vm106_vm3 = vcmp.le.f32.partialorder %v1357_v9, 4.0 }
  0x26   :  { %v64_v29 = vmul.f32 %v1254_v53, %v62_v16  ;;  %v88_v11 = vsub.f32 1.0, %v86_v24  ;;  %v96_v30 = vmul.f32 %v1258_v21, %v86_v24  ;;  %v1445_v32 = vrot.slane %v1240_v47, %v1352_v7 }
  0x27   :  { %v97_v33 = vmul.f32 %v87_v25, %v63_v22  ;;  %v1448_v34 = vrot.slane %v1240_v47, %v1355_v8  ;;  %v1451_v36 = vrot.slane %v1240_v47, %v1366_v12  ;;  %v1454_v14 = vrot.slane %v1240_v47, %v1375_v15 }
  0x28   :  { %v98_v37 = vmul.f32 %v88_v11, %v64_v29  ;;  %v1457_v38 = vrot.slane %v1240_v47, %v1381_v19  ;;  %v1460_v39 = vrot.slane %v1242_v60, %v1341_v3  ;;  %v1463_v40 = vrot.slane %v1242_v60, %v1346_v5 }
  0x29   :  { %v99_v42 = vadd.f32 %v97_v33, %v95_v28  ;;  %vm148_vm4 = vcmp.eq.s32.totalorder %v1338_v2, %v1427_v0  ;;  %vm149_vm5 = vcmp.eq.s32.totalorder %v1387_v23, %v1427_v0  ;;  %vm204_vm6 = vcmp.eq.s32.totalorder %v1338_v2, %v1436_v18 }
  0x2a   :  { %v100_v43 = vadd.f32 %v98_v37, %v96_v30  ;;  %vm205_vm7 = vcmp.eq.s32.totalorder %v1387_v23, %v1436_v18  ;;  %vm260_vm8 = vcmp.eq.s32.totalorder %v1338_v2, %v1439_v20  ;;  %vm261_vm9 = vcmp.eq.s32.totalorder %v1387_v23, %v1439_v20 }
  0x2b   :  { %v101_v45 = vadd.f32 %v1161_v46, %v99_v42  ;;  %vm316_vm10 = vcmp.eq.s32.totalorder %v1338_v2, %v1445_v32  ;;  %vm317_vm11 = vcmp.eq.s32.totalorder %v1387_v23, %v1445_v32  ;;  %vm484_vm0 = vcmp.eq.s32.totalorder %v1338_v2, %v1454_v14 }
  0x2c   :  { %v102_v47 = vadd.f32 %v1162_v50, %v100_v43  ;;  %vm485_vm1 = vcmp.eq.s32.totalorder %v1387_v23, %v1454_v14  ;;  %vm540_vm12 = vcmp.eq.s32.totalorder %v1338_v2, %v1457_v38  ;;  %vm597_vm15 = vcmp.eq.s32.totalorder %v1387_v23, %v1460_v39 }
  0x2d   :  { %v103_v46 = vmul.f32 %v101_v45, %v93_v51  ;;  %v1502_v49 = vrot.slane %v1242_v60, %v1349_v6  ;;  %v1505_v50 = vrot.slane %v1242_v60, %v1352_v7  ;;  %v1508_v51 = vrot.slane %v1242_v60, %v1355_v8 }
  0x2e   :  { %v104_v48 = vmul.f32 %v102_v47, %v94_v52  ;;  %vm652_vm13 = vcmp.eq.s32.totalorder %v1338_v2, %v1463_v40  ;;  %vm653_vm14 = vcmp.eq.s32.totalorder %v1387_v23, %v1463_v40  ;;  %v1517_v53 = vrot.slane %v1242_v60, %v1366_v12 }
  0x2f   :  { %v107_v52 = vsel %vm105_vm2, %v103_v46, 0.0  ;;  %v1520_v54 = vrot.slane %v1242_v60, %v1375_v15  ;;  %v1523_v55 = vrot.slane %v1242_v60, %v1381_v19  ;;  %vm2413_vm2 = vcmp.eq.s32.totalorder %v1338_v2, %v1448_v34 }
  0x30   :  { %v108_v58 = vsel %vm106_vm3, %v104_v48, 0.0  ;;  %v1528_v4 = vrot.slane %v107_v52, %v1341_v3  ;;  %v1531_v59 = vrot.slane %v107_v52, %v1346_v5  ;;  %v1534_v62 = vrot.slane %v107_v52, %v1349_v6 }
  0x31   :  { %v1537_v63 = vrot.slane %v107_v52, %v1352_v7  ;;  %v1540_v13 = vrot.slane %v107_v52, %v1355_v8  ;;  %v1543_v60 = vrot.slane %v107_v52, %v1366_v12  ;;  %v1546_v9 = vrot.slane %v107_v52, %v1375_v15 }
  0x32   :  { %v1549_v16 = vrot.slane %v107_v52, %v1381_v19  ;;  %v1552_v17 = vrot.slane %v108_v58, %v1341_v3  ;;  %v1555_v21 = vrot.slane %v108_v58, %v1346_v5  ;;  %v1558_v22 = vrot.slane %v108_v58, %v1349_v6 }
  0x33   :  { %v1561_v24 = vrot.slane %v108_v58, %v1352_v7  ;;  %v1564_v25 = vrot.slane %v108_v58, %v1355_v8  ;;  %v1567_v28 = vrot.slane %v108_v58, %v1366_v12  ;;  %v1570_v29 = vrot.slane %v108_v58, %v1375_v15 }
  0x34   :  { %v1573_v3 = vrot.slane %v108_v58, %v1381_v19  ;;  %v168_v5 = vsel %vm148_vm4, %v1528_v4, 0.0  ;;  %v169_v6 = vsel %vm149_vm5, %v1528_v4, 0.0  ;;  %v224_v7 = vsel %vm204_vm6, %v1531_v59, 0.0 }
  0x35   :  { %v225_v8 = vsel %vm205_vm7, %v1531_v59, 0.0  ;;  %v240_v12 = vadd.f32 %v224_v7, %v168_v5  ;;  %v280_v15 = vsel %vm260_vm8, %v1534_v62, 0.0  ;;  %v281_v19 = vsel %vm261_vm9, %v1534_v62, 0.0 }
  0x36   :  { %v241_v11 = vadd.f32 %v225_v8, %v169_v6  ;;  %v336_v30 = vsel %vm316_vm10, %v1537_v63, 0.0  ;;  %v337_v33 = vsel %vm317_vm11, %v1537_v63, 0.0  ;;  %v392_v37 = vsel %vm2413_vm2, %v1540_v13, 0.0 }
  0x37   :  { %v296_v42 = vadd.f32 %v280_v15, %v240_v12  ;;  %vm2414_vm3 = vcmp.eq.s32.totalorder %v1387_v23, %v1448_v34  ;;  %vm2415_vm4 = vcmp.eq.s32.totalorder %v1338_v2, %v1451_v36  ;;  %vm2416_vm5 = vcmp.eq.s32.totalorder %v1387_v23, %v1451_v36 }
  0x38   :  { %v393_v43 = vsel %vm2414_vm3, %v1540_v13, 0.0  ;;  %v448_v45 = vsel %vm2415_vm4, %v1543_v60, 0.0  ;;  %v449_v47 = vsel %vm2416_vm5, %v1543_v60, 0.0  ;;  %v297_v46 = vadd.f32 %v281_v19, %v241_v11 }
  0x39   :  { %v504_v48 = vsel %vm484_vm0, %v1546_v9, 0.0  ;;  %v505_v52 = vsel %vm485_vm1, %v1546_v9, 0.0  ;;  %v560_v58 = vsel %vm540_vm12, %v1549_v16, 0.0  ;;  %v352_v5 = vadd.f32 %v336_v30, %v296_v42 }
  0x3a   :  { %vm2417_vm6 = vcmp.eq.s32.totalorder %v1387_v23, %v1457_v38  ;;  %vm2418_vm7 = vcmp.eq.s32.totalorder %v1338_v2, %v1460_v39  ;;  %v617_v8 = vsel %vm597_vm15, %v1552_v17, 0.0  ;;  %v353_v12 = vadd.f32 %v337_v33, %v297_v46 }
  0x3b   :  { %v561_v6 = vsel %vm2417_vm6, %v1549_v16, 0.0  ;;  %v616_v7 = vsel %vm2418_vm7, %v1552_v17, 0.0  ;;  %v672_v15 = vsel %vm652_vm13, %v1555_v21, 0.0  ;;  %v673_v19 = vsel %vm653_vm14, %v1555_v21, 0.0 }
  0x3c   :  { %vm708_vm8 = vcmp.eq.s32.totalorder %v1338_v2, %v1502_v49  ;;  %v408_v11 = vadd.f32 %v392_v37, %v352_v5  ;;  %vm709_vm9 = vcmp.eq.s32.totalorder %v1387_v23, %v1502_v49  ;;  %vm764_vm10 = vcmp.eq.s32.totalorder %v1338_v2, %v1505_v50 }
  0x3d   :  { %v728_v30 = vsel %vm708_vm8, %v1558_v22, 0.0  ;;  %v409_v33 = vadd.f32 %v393_v43, %v353_v12  ;;  %v729_v42 = vsel %vm709_vm9, %v1558_v22, 0.0  ;;  %vm765_vm11 = vcmp.eq.s32.totalorder %v1387_v23, %v1505_v50 }
  0x3e   :  { %v784_v46 = vsel %vm764_vm10, %v1561_v24, 0.0  ;;  %v464_v1 = vadd.f32 %v448_v45, %v408_v11  ;;  %v785_v10 = vsel %vm765_vm11, %v1561_v24, 0.0  ;;  %vm820_vm12 = vcmp.eq.s32.totalorder %v1338_v2, %v1508_v51 }
  0x3f   :  { %vm821_vm13 = vcmp.eq.s32.totalorder %v1387_v23, %v1508_v51  ;;  %v465_v37 = vadd.f32 %v449_v47, %v409_v33  ;;  %v840_v5 = vsel %vm820_vm12, %v1564_v25, 0.0  ;;  %vm876_vm14 = vcmp.eq.s32.totalorder %v1338_v2, %v1517_v53 }
  0x40   :  { %v841_v43 = vsel %vm821_vm13, %v1564_v25, 0.0  ;;  %v520_v12 = vadd.f32 %v504_v48, %v464_v1  ;;  %vm877_vm15 = vcmp.eq.s32.totalorder %v1387_v23, %v1517_v53  ;;  %v896_v45 = vsel %vm876_vm14, %v1567_v28, 0.0 }
  0x41   :  { %vm932_vm0 = vcmp.eq.s32.totalorder %v1338_v2, %v1520_v54  ;;  %v521_v11 = vadd.f32 %v505_v52, %v465_v37  ;;  %v897_v61 = vsel %vm877_vm15, %v1567_v28, 0.0  ;;  %vm933_vm1 = vcmp.eq.s32.totalorder %v1387_v23, %v1520_v54 }
  0x42   :  { %v952_v47 = vsel %vm932_vm0, %v1570_v29, 0.0  ;;  %v576_v33 = vadd.f32 %v560_v58, %v520_v12  ;;  %v953_v57 = vsel %vm933_vm1, %v1570_v29, 0.0  ;;  %vm988_vm2 = vcmp.eq.s32.totalorder %v1338_v2, %v1523_v55 }
  0x43   :  { %vm989_vm3 = vcmp.eq.s32.totalorder %v1387_v23, %v1523_v55  ;;  %v577_v1 = vadd.f32 %v561_v6, %v521_v11  ;;  %v1008_v48 = vsel %vm988_vm2, %v1573_v3, 0.0  ;;  %vm150_vm4 = vcmp.eq.s32.totalorder %v1390_v26, %v1427_v0 }
  0x44   :  { %v1009_v52 = vsel %vm989_vm3, %v1573_v3, 0.0  ;;  %v632_v37 = vadd.f32 %v616_v7, %v576_v33  ;;  %vm151_vm5 = vcmp.eq.s32.totalorder %v1393_v27, %v1427_v0  ;;  %v170_v58 = vsel %vm150_vm4, %v1528_v4, 0.0 }
  0x45   :  { %vm206_vm6 = vcmp.eq.s32.totalorder %v1390_v26, %v1436_v18  ;;  %v633_v12 = vadd.f32 %v617_v8, %v577_v1  ;;  %v171_v23 = vsel %vm151_vm5, %v1528_v4, 0.0  ;;  %vm207_vm7 = vcmp.eq.s32.totalorder %v1393_v27, %v1436_v18 }
  0x46   :  { %v226_v6 = vsel %vm206_vm6, %v1531_v59, 0.0  ;;  %v688_v11 = vadd.f32 %v672_v15, %v632_v37  ;;  %v227_v2 = vsel %vm207_vm7, %v1531_v59, 0.0  ;;  %vm262_vm8 = vcmp.eq.s32.totalorder %v1390_v26, %v1439_v20 }
  0x47   :  { %v242_v7 = vadd.f32 %v226_v6, %v170_v58  ;;  %v689_v33 = vadd.f32 %v673_v19, %v633_v12  ;;  %v243_v56 = vadd.f32 %v227_v2, %v171_v23  ;;  %vm263_vm9 = vcmp.eq.s32.totalorder %v1393_v27, %v1439_v20 }
  0x48   :  { %v282_v8 = vsel %vm262_vm8, %v1534_v62, 0.0  ;;  %v744_v1 = vadd.f32 %v728_v30, %v688_v11  ;;  %v283_v44 = vsel %vm263_vm9, %v1534_v62, 0.0  ;;  %vm318_vm10 = vcmp.eq.s32.totalorder %v1390_v26, %v1445_v32 }
  0x49   :  { %v298_v41 = vadd.f32 %v282_v8, %v242_v7  ;;  %v745_v15 = vadd.f32 %v729_v42, %v689_v33  ;;  %v299_v37 = vadd.f32 %v283_v44, %v243_v56  ;;  %vm319_vm11 = vcmp.eq.s32.totalorder %v1393_v27, %v1445_v32 }
  0x4a   :  { %v338_v19 = vsel %vm318_vm10, %v1537_v63, 0.0  ;;  %v800_v2 = vadd.f32 %v784_v46, %v744_v1  ;;  %v339_v58 = vsel %vm319_vm11, %v1537_v63, 0.0  ;;  %vm374_vm12 = vcmp.eq.s32.totalorder %v1390_v26, %v1448_v34 }
  0x4b   :  { %v354_v12 = vadd.f32 %v338_v19, %v298_v41  ;;  %v801_v30 = vadd.f32 %v785_v10, %v745_v15  ;;  %v355_v23 = vadd.f32 %v339_v58, %v299_v37  ;;  %vm375_vm13 = vcmp.eq.s32.totalorder %v1393_v27, %v1448_v34 }
  0x4c   :  { %v394_v42 = vsel %vm374_vm12, %v1540_v13, 0.0  ;;  %v856_v44 = vadd.f32 %v840_v5, %v800_v2  ;;  %v395_v56 = vsel %vm375_vm13, %v1540_v13, 0.0  ;;  %vm430_vm14 = vcmp.eq.s32.totalorder %v1390_v26, %v1451_v36 }
  0x4d   :  { %v410_v6 = vadd.f32 %v394_v42, %v354_v12  ;;  %v857_v46 = vadd.f32 %v841_v43, %v801_v30  ;;  %v411_v11 = vadd.f32 %v395_v56, %v355_v23  ;;  %vm431_vm15 = vcmp.eq.s32.totalorder %v1393_v27, %v1451_v36 }
  0x4e   :  { %v450_v41 = vsel %vm430_vm14, %v1543_v60, 0.0  ;;  %v912_v10 = vadd.f32 %v896_v45, %v856_v44  ;;  %v451_v7 = vsel %vm431_vm15, %v1543_v60, 0.0  ;;  %vm486_vm0 = vcmp.eq.s32.totalorder %v1390_v26, %v1454_v14 }
  0x4f   :  { %v466_v33 = vadd.f32 %v450_v41, %v410_v6  ;;  %v913_v5 = vadd.f32 %v897_v61, %v857_v46  ;;  %v467_v8 = vadd.f32 %v451_v7, %v411_v11  ;;  %vm487_vm1 = vcmp.eq.s32.totalorder %v1393_v27, %v1454_v14 }
  0x50   :  { %v506_v43 = vsel %vm486_vm0, %v1546_v9, 0.0  ;;  %v968_v1 = vadd.f32 %v952_v47, %v912_v10  ;;  %v507_v15 = vsel %vm487_vm1, %v1546_v9, 0.0  ;;  %vm542_vm2 = vcmp.eq.s32.totalorder %v1390_v26, %v1457_v38 }
  0x51   :  { %v522_v37 = vadd.f32 %v506_v43, %v466_v33  ;;  %v969_v45 = vadd.f32 %v953_v57, %v913_v5  ;;  %v523_v19 = vadd.f32 %v507_v15, %v467_v8  ;;  %vm543_vm3 = vcmp.eq.s32.totalorder %v1393_v27, %v1457_v38 }
  0x52   :  { %v562_v61 = vsel %vm542_vm2, %v1549_v16, 0.0  ;;  %v1024_v2 = vadd.f32 %v1008_v48, %v968_v1  ;;  %v563_v58 = vsel %vm543_vm3, %v1549_v16, 0.0  ;;  %vm598_vm4 = vcmp.eq.s32.totalorder %v1390_v26, %v1460_v39 }
  0x53   :  { %v578_v12 = vadd.f32 %v562_v61, %v522_v37  ;;  %v1025_v47 = vadd.f32 %v1009_v52, %v969_v45  ;;  %v579_v30 = vadd.f32 %v563_v58, %v523_v19  ;;  %vm599_vm5 = vcmp.eq.s32.totalorder %v1393_v27, %v1460_v39 }
  0x54   :  { %v618_v57 = vsel %vm598_vm4, %v1552_v17, 0.0  ;;  %v619_v23 = vsel %vm599_vm5, %v1552_v17, 0.0  ;;  %vm654_vm6 = vcmp.eq.s32.totalorder %v1390_v26, %v1463_v40  ;;  %vm655_vm7 = vcmp.eq.s32.totalorder %v1393_v27, %v1463_v40 }
  0x55   :  { %v634_v42 = vadd.f32 %v618_v57, %v578_v12  ;;  %v1216_v48 = vpack.c.bf16 %v1025_v47, %v1024_v2  ;;  %v635_v44 = vadd.f32 %v619_v23, %v579_v30  ;;  %v674_v56 = vsel %vm654_vm6, %v1555_v21, 0.0 }
  0x56   :  { %v675_v52 = vsel %vm655_vm7, %v1555_v21, 0.0  ;;  %vm710_vm8 = vcmp.eq.s32.totalorder %v1390_v26, %v1502_v49  ;;  %vm711_vm9 = vcmp.eq.s32.totalorder %v1393_v27, %v1502_v49  ;;  %vm766_vm10 = vcmp.eq.s32.totalorder %v1390_v26, %v1505_v50 }
  0x57   :  { %v690_v6 = vadd.f32 %v674_v56, %v634_v42  ;;  %1217 = vmatpush3.bf16.xpose.msra.mxu0 %v1216_v48  ;;  %v691_v46 = vadd.f32 %v675_v52, %v635_v44  ;;  %v730_v11 = vsel %vm710_vm8, %v1558_v22, 0.0  ;;  %v731_v41 = vsel %vm711_vm9, %v1558_v22, 0.0 }
  0x58   :  { %vm767_vm11 = vcmp.eq.s32.totalorder %v1393_v27, %v1505_v50  ;;  %v2419_v10 = vmov 0.0|0.0   ;;  %v786_v33 = vsel %vm766_vm10, %v1561_v24, 0.0  ;;  %vm822_vm12 = vcmp.eq.s32.totalorder %v1390_v26, %v1508_v51 }
  0x59   :  { %1218 = vmatprep.subr.bf16.mxu0 %v2419_v10  ;;  %v746_v7 = vadd.f32 %v730_v11, %v690_v6  ;;  %v787_v5 = vsel %vm767_vm11, %v1561_v24, 0.0  ;;  %v747_v8 = vadd.f32 %v731_v41, %v691_v46  ;;  %vm823_vm13 = vcmp.eq.s32.totalorder %v1393_v27, %v1508_v51 }
  0x5a   :  { %v842_v43 = vsel %vm822_vm12, %v1564_v25, 0.0  ;;  %vm878_vm14 = vcmp.eq.s32.totalorder %v1390_v26, %v1517_v53  ;;  %v843_v15 = vsel %vm823_vm13, %v1564_v25, 0.0  ;;  %vm879_vm15 = vcmp.eq.s32.totalorder %v1393_v27, %v1517_v53 }
  0x5b   :  { %v802_v1 = vadd.f32 %v786_v33, %v746_v7  ;;  %v898_v37 = vsel %vm878_vm14, %v1567_v28, 0.0  ;;  %v803_v45 = vadd.f32 %v787_v5, %v747_v8  ;;  %v899_v19 = vsel %vm879_vm15, %v1567_v28, 0.0 }
  0x5c   :  { %vm934_vm0 = vcmp.eq.s32.totalorder %v1390_v26, %v1520_v54  ;;  %vm935_vm1 = vcmp.eq.s32.totalorder %v1393_v27, %v1520_v54  ;;  %vm990_vm2 = vcmp.eq.s32.totalorder %v1390_v26, %v1523_v55  ;;  %vm991_vm3 = vcmp.eq.s32.totalorder %v1393_v27, %v1523_v55 }
  0x5d   :  { %v858_v61 = vadd.f32 %v842_v43, %v802_v1  ;;  %v954_v2 = vsel %vm934_vm0, %v1570_v29, 0.0  ;;  %v955_v58 = vsel %vm935_vm1, %v1570_v29, 0.0  ;;  %v859_v12 = vadd.f32 %v843_v15, %v803_v45 }
  0x5e   :  { %v1010_v47 = vsel %vm990_vm2, %v1573_v3, 0.0  ;;  %vm152_vm4 = vcmp.eq.s32.totalorder %v1397_v31, %v1427_v0  ;;  %v1011_v57 = vsel %vm991_vm3, %v1573_v3, 0.0  ;;  %vm153_vm5 = vcmp.eq.s32.totalorder %v1403_v35, %v1427_v0 }
  0x5f   :  { %v914_v30 = vadd.f32 %v898_v37, %v858_v61  ;;  %v172_v23 = vsel %vm152_vm4, %v1528_v4, 0.0  ;;  %v915_v42 = vadd.f32 %v899_v19, %v859_v12  ;;  %v173_v26 = vsel %vm153_vm5, %v1528_v4, 0.0 }
  0x60   :  { %vm208_vm6 = vcmp.eq.s32.totalorder %v1397_v31, %v1436_v18  ;;  %vm209_vm7 = vcmp.eq.s32.totalorder %v1403_v35, %v1436_v18  ;;  %vm264_vm8 = vcmp.eq.s32.totalorder %v1397_v31, %v1439_v20  ;;  %vm265_vm9 = vcmp.eq.s32.totalorder %v1403_v35, %v1439_v20 }
  0x61   :  { %v970_v27 = vadd.f32 %v954_v2, %v914_v30  ;;  %v228_v48 = vsel %vm208_vm6, %v1531_v59, 0.0  ;;  %v229_v44 = vsel %vm209_vm7, %v1531_v59, 0.0  ;;  %v971_v56 = vadd.f32 %v955_v58, %v915_v42 }
  0x62   :  { %v244_v52 = vadd.f32 %v228_v48, %v172_v23  ;;  %v245_v6 = vadd.f32 %v229_v44, %v173_v26  ;;  %v284_v11 = vsel %vm264_vm8, %v1534_v62, 0.0  ;;  %v285_v41 = vsel %vm265_vm9, %v1534_v62, 0.0 }
  0x63   :  { %v1026_v46 = vadd.f32 %v1010_v47, %v970_v27  ;;  %vm320_vm10 = vcmp.eq.s32.totalorder %v1397_v31, %v1445_v32  ;;  %v1027_v7 = vadd.f32 %v1011_v57, %v971_v56  ;;  %vm321_vm11 = vcmp.eq.s32.totalorder %v1403_v35, %v1445_v32 }
  0x64   :  { %v300_v33 = vadd.f32 %v284_v11, %v244_v52  ;;  %v301_v5 = vadd.f32 %v285_v41, %v245_v6  ;;  %v340_v8 = vsel %vm320_vm10, %v1537_v63, 0.0  ;;  %v341_v43 = vsel %vm321_vm11, %v1537_v63, 0.0 }
  0x65   :  { %vm376_vm12 = vcmp.eq.s32.totalorder %v1397_v31, %v1448_v34  ;;  %vm377_vm13 = vcmp.eq.s32.totalorder %v1403_v35, %v1448_v34  ;;  %v1219_v1 = vpack.c.bf16 %v1027_v7, %v1026_v46  ;;  %vm432_vm14 = vcmp.eq.s32.totalorder %v1397_v31, %v1451_v36 }
  0x66   :  { %v356_v15 = vadd.f32 %v340_v8, %v300_v33  ;;  %v357_v37 = vadd.f32 %v341_v43, %v301_v5  ;;  %v396_v45 = vsel %vm376_vm12, %v1540_v13, 0.0  ;;  %v397_v19 = vsel %vm377_vm13, %v1540_v13, 0.0 }
  0x67   :  { %vm433_vm15 = vcmp.eq.s32.totalorder %v1403_v35, %v1451_v36  ;;  %vm488_vm0 = vcmp.eq.s32.totalorder %v1397_v31, %v1454_v14  ;;  %1220 = vmatpush3.bf16.xpose.msra.mxu0 %v1219_v1  ;;  %v452_v58 = vsel %vm432_vm14, %v1543_v60, 0.0  ;;  %vm489_vm1 = vcmp.eq.s32.totalorder %v1403_v35, %v1454_v14 }
  0x68   :  { %v412_v61 = vadd.f32 %v396_v45, %v356_v15  ;;  %v413_v2 = vadd.f32 %v397_v19, %v357_v37  ;;  %v453_v12 = vsel %vm433_vm15, %v1543_v60, 0.0  ;;  %1221 = vmatprep.subr.bf16.mxu0 %v2419_v10  ;;  %v508_v47 = vsel %vm488_vm0, %v1546_v9, 0.0 }
  0x69   :  { %vm544_vm2 = vcmp.eq.s32.totalorder %v1397_v31, %v1457_v38  ;;  %vm545_vm3 = vcmp.eq.s32.totalorder %v1403_v35, %v1457_v38  ;;  %v509_v23 = vsel %vm489_vm1, %v1546_v9, 0.0  ;;  %vm600_vm4 = vcmp.eq.s32.totalorder %v1397_v31, %v1460_v39 }
  0x6a   :  { %v468_v30 = vadd.f32 %v452_v58, %v412_v61  ;;  %v469_v57 = vadd.f32 %v453_v12, %v413_v2  ;;  %v564_v42 = vsel %vm544_vm2, %v1549_v16, 0.0  ;;  %v565_v26 = vsel %vm545_vm3, %v1549_v16, 0.0 }
  0x6b   :  { %vm601_vm5 = vcmp.eq.s32.totalorder %v1403_v35, %v1460_v39  ;;  %vm656_vm6 = vcmp.eq.s32.totalorder %v1397_v31, %v1463_v40  ;;  %v620_v44 = vsel %vm600_vm4, %v1552_v17, 0.0  ;;  %vm657_vm7 = vcmp.eq.s32.totalorder %v1403_v35, %v1463_v40 }
  0x6c   :  { %v524_v27 = vadd.f32 %v508_v47, %v468_v30  ;;  %v525_v48 = vadd.f32 %v509_v23, %v469_v57  ;;  %v621_v56 = vsel %vm601_vm5, %v1552_v17, 0.0  ;;  %v676_v52 = vsel %vm656_vm6, %v1555_v21, 0.0  ;;  %v2420_v57 = vld [vmem:[#allocation10_spill] sm:$0xff]  ;;  %v2421_v23 = vld [vmem:[#allocation11_spill] sm:$0xff] }
  0x6d   :  { %vm712_vm8 = vcmp.eq.s32.totalorder %v1397_v31, %v1502_v49  ;;  %vm713_vm9 = vcmp.eq.s32.totalorder %v1403_v35, %v1502_v49  ;;  %v677_v11 = vsel %vm657_vm7, %v1555_v21, 0.0  ;;  %vm768_vm10 = vcmp.eq.s32.totalorder %v1397_v31, %v1505_v50 }
  0x6e   :  { %v580_v6 = vadd.f32 %v564_v42, %v524_v27  ;;  %v581_v46 = vadd.f32 %v565_v26, %v525_v48  ;;  %v732_v41 = vsel %vm712_vm8, %v1558_v22, 0.0  ;;  %v733_v7 = vsel %vm713_vm9, %v1558_v22, 0.0 }
  0x6f   :  { %vm769_vm11 = vcmp.eq.s32.totalorder %v1403_v35, %v1505_v50  ;;  %vm824_vm12 = vcmp.eq.s32.totalorder %v1397_v31, %v1508_v51  ;;  %v788_v8 = vsel %vm768_vm10, %v1561_v24, 0.0  ;;  %vm825_vm13 = vcmp.eq.s32.totalorder %v1403_v35, %v1508_v51 }
  0x70   :  { %v636_v33 = vadd.f32 %v620_v44, %v580_v6  ;;  %v637_v5 = vadd.f32 %v621_v56, %v581_v46  ;;  %v789_v43 = vsel %vm769_vm11, %v1561_v24, 0.0  ;;  %v844_v1 = vsel %vm824_vm12, %v1564_v25, 0.0 }
  0x71   :  { %vm880_vm14 = vcmp.eq.s32.totalorder %v1397_v31, %v1517_v53  ;;  %vm881_vm15 = vcmp.eq.s32.totalorder %v1403_v35, %v1517_v53  ;;  %v845_v45 = vsel %vm825_vm13, %v1564_v25, 0.0  ;;  %vm936_vm0 = vcmp.eq.s32.totalorder %v1397_v31, %v1520_v54 }
  0x72   :  { %v692_v15 = vadd.f32 %v676_v52, %v636_v33  ;;  %v693_v37 = vadd.f32 %v677_v11, %v637_v5  ;;  %v900_v19 = vsel %vm880_vm14, %v1567_v28, 0.0  ;;  %v901_v61 = vsel %vm881_vm15, %v1567_v28, 0.0 }
  0x73   :  { %vm937_vm1 = vcmp.eq.s32.totalorder %v1403_v35, %v1520_v54  ;;  %vm992_vm2 = vcmp.eq.s32.totalorder %v1397_v31, %v1523_v55  ;;  %v956_v12 = vsel %vm936_vm0, %v1570_v29, 0.0  ;;  %vm993_vm3 = vcmp.eq.s32.totalorder %v1403_v35, %v1523_v55 }
  0x74   :  { %v748_v2 = vadd.f32 %v732_v41, %v692_v15  ;;  %v749_v58 = vadd.f32 %v733_v7, %v693_v37  ;;  %v957_v47 = vsel %vm937_vm1, %v1570_v29, 0.0  ;;  %v1012_v30 = vsel %vm992_vm2, %v1573_v3, 0.0 }
  0x75   :  { %vm154_vm4 = vcmp.eq.s32.totalorder %v2420_v57, %v1427_v0  ;;  %vm155_vm5 = vcmp.eq.s32.totalorder %v2421_v23, %v1427_v0  ;;  %v1013_v31 = vsel %vm993_vm3, %v1573_v3, 0.0  ;;  %vm210_vm6 = vcmp.eq.s32.totalorder %v2420_v57, %v1436_v18 }
  0x76   :  { %v804_v42 = vadd.f32 %v788_v8, %v748_v2  ;;  %v805_v26 = vadd.f32 %v789_v43, %v749_v58  ;;  %v174_v27 = vsel %vm154_vm4, %v1528_v4, 0.0  ;;  %v175_v48 = vsel %vm155_vm5, %v1528_v4, 0.0 }
  0x77   :  { %vm211_vm7 = vcmp.eq.s32.totalorder %v2421_v23, %v1436_v18  ;;  %vm266_vm8 = vcmp.eq.s32.totalorder %v2420_v57, %v1439_v20  ;;  %v230_v56 = vsel %vm210_vm6, %v1531_v59, 0.0  ;;  %vm267_vm9 = vcmp.eq.s32.totalorder %v2421_v23, %v1439_v20 }
  0x78   :  { %v860_v35 = vadd.f32 %v844_v1, %v804_v42  ;;  %v861_v44 = vadd.f32 %v845_v45, %v805_v26  ;;  %v231_v52 = vsel %vm211_vm7, %v1531_v59, 0.0  ;;  %v246_v6 = vadd.f32 %v230_v56, %v174_v27 }
  0x79   :  { %v247_v46 = vadd.f32 %v231_v52, %v175_v48  ;;  %v286_v11 = vsel %vm266_vm8, %v1534_v62, 0.0  ;;  %v287_v33 = vsel %vm267_vm9, %v1534_v62, 0.0  ;;  %vm322_vm10 = vcmp.eq.s32.totalorder %v2420_v57, %v1445_v32 }
  0x7a   :  { %v916_v41 = vadd.f32 %v900_v19, %v860_v35  ;;  %v917_v7 = vadd.f32 %v901_v61, %v861_v44  ;;  %v302_v5 = vadd.f32 %v286_v11, %v246_v6  ;;  %vm323_vm11 = vcmp.eq.s32.totalorder %v2421_v23, %v1445_v32 }
  0x7b   :  { %v303_v8 = vadd.f32 %v287_v33, %v247_v46  ;;  %v342_v43 = vsel %vm322_vm10, %v1537_v63, 0.0  ;;  %v343_v37 = vsel %vm323_vm11, %v1537_v63, 0.0  ;;  %vm378_vm12 = vcmp.eq.s32.totalorder %v2420_v57, %v1448_v34 }
  0x7c   :  { %v972_v1 = vadd.f32 %v956_v12, %v916_v41  ;;  %v973_v15 = vadd.f32 %v957_v47, %v917_v7  ;;  %v358_v45 = vadd.f32 %v342_v43, %v302_v5  ;;  %vm379_vm13 = vcmp.eq.s32.totalorder %v2421_v23, %v1448_v34 }
  0x7d   :  { %v359_v19 = vadd.f32 %v343_v37, %v303_v8  ;;  %v398_v61 = vsel %vm378_vm12, %v1540_v13, 0.0  ;;  %v399_v42 = vsel %vm379_vm13, %v1540_v13, 0.0  ;;  %vm434_vm14 = vcmp.eq.s32.totalorder %v2420_v57, %v1451_v36 }
  0x7e   :  { %v1028_v2 = vadd.f32 %v1012_v30, %v972_v1  ;;  %v1029_v58 = vadd.f32 %v1013_v31, %v973_v15  ;;  %v414_v12 = vadd.f32 %v398_v61, %v358_v45  ;;  %vm435_vm15 = vcmp.eq.s32.totalorder %v2421_v23, %v1451_v36 }
  0x7f   :  { %v415_v47 = vadd.f32 %v399_v42, %v359_v19  ;;  %v454_v26 = vsel %vm434_vm14, %v1543_v60, 0.0  ;;  %v455_v48 = vsel %vm435_vm15, %v1543_v60, 0.0  ;;  %vm490_vm0 = vcmp.eq.s32.totalorder %v2420_v57, %v1454_v14 }
  0x80   :  { %v1222_v27 = vpack.c.bf16 %v1029_v58, %v1028_v2  ;;  %vm491_vm1 = vcmp.eq.s32.totalorder %v2421_v23, %v1454_v14  ;;  %v470_v30 = vadd.f32 %v454_v26, %v414_v12  ;;  %v510_v35 = vsel %vm490_vm0, %v1546_v9, 0.0 }
  0x81   :  { %v471_v31 = vadd.f32 %v455_v48, %v415_v47  ;;  %v511_v44 = vsel %vm491_vm1, %v1546_v9, 0.0  ;;  %vm546_vm2 = vcmp.eq.s32.totalorder %v2420_v57, %v1457_v38  ;;  %vm547_vm3 = vcmp.eq.s32.totalorder %v2421_v23, %v1457_v38 }
  0x82   :  { %1223 = vmatpush3.bf16.xpose.msra.mxu0 %v1222_v27  ;;  %vm602_vm4 = vcmp.eq.s32.totalorder %v2420_v57, %v1460_v39  ;;  %vm603_vm5 = vcmp.eq.s32.totalorder %v2421_v23, %v1460_v39  ;;  %v526_v56 = vadd.f32 %v510_v35, %v470_v30  ;;  %v566_v6 = vsel %vm546_vm2, %v1549_v16, 0.0 }
  0x83   :  { %1224 = vmatprep.subr.bf16.mxu0 %v2419_v10  ;;  %v527_v52 = vadd.f32 %v511_v44, %v471_v31  ;;  %v567_v46 = vsel %vm547_vm3, %v1549_v16, 0.0  ;;  %v622_v11 = vsel %vm602_vm4, %v1552_v17, 0.0  ;;  %v623_v41 = vsel %vm603_vm5, %v1552_v17, 0.0 }
  0x84   :  { %vm658_vm6 = vcmp.eq.s32.totalorder %v2420_v57, %v1463_v40  ;;  %vm659_vm7 = vcmp.eq.s32.totalorder %v2421_v23, %v1463_v40  ;;  %v582_v7 = vadd.f32 %v566_v6, %v526_v56  ;;  %vm714_vm8 = vcmp.eq.s32.totalorder %v2420_v57, %v1502_v49  ;;  %v2423_v6 = vld [vmem:[#allocation13_spill] sm:$0xff] }
  0x85   :  { %v583_v33 = vadd.f32 %v567_v46, %v527_v52  ;;  %v678_v5 = vsel %vm658_vm6, %v1555_v21, 0.0  ;;  %v679_v8 = vsel %vm659_vm7, %v1555_v21, 0.0  ;;  %vm715_vm9 = vcmp.eq.s32.totalorder %v2421_v23, %v1502_v49  ;;  %v2422_v52 = vld [vmem:[#allocation12_spill] sm:$0xff] }
  0x86   :  { %vm770_vm10 = vcmp.eq.s32.totalorder %v2420_v57, %v1505_v50  ;;  %vm771_vm11 = vcmp.eq.s32.totalorder %v2421_v23, %v1505_v50  ;;  %v638_v43 = vadd.f32 %v622_v11, %v582_v7  ;;  %v734_v15 = vsel %vm714_vm8, %v1558_v22, 0.0 }
  0x87   :  { %v639_v1 = vadd.f32 %v623_v41, %v583_v33  ;;  %v735_v37 = vsel %vm715_vm9, %v1558_v22, 0.0  ;;  %v790_v45 = vsel %vm770_vm10, %v1561_v24, 0.0  ;;  %v791_v19 = vsel %vm771_vm11, %v1561_v24, 0.0 }
  0x88   :  { %vm826_vm12 = vcmp.eq.s32.totalorder %v2420_v57, %v1508_v51  ;;  %vm827_vm13 = vcmp.eq.s32.totalorder %v2421_v23, %v1508_v51  ;;  %v694_v61 = vadd.f32 %v678_v5, %v638_v43  ;;  %vm882_vm14 = vcmp.eq.s32.totalorder %v2420_v57, %v1517_v53 }
  0x89   :  { %v695_v2 = vadd.f32 %v679_v8, %v639_v1  ;;  %v846_v58 = vsel %vm826_vm12, %v1564_v25, 0.0  ;;  %v847_v42 = vsel %vm827_vm13, %v1564_v25, 0.0  ;;  %vm883_vm15 = vcmp.eq.s32.totalorder %v2421_v23, %v1517_v53 }
  0x8a   :  { %vm938_vm0 = vcmp.eq.s32.totalorder %v2420_v57, %v1520_v54  ;;  %vm939_vm1 = vcmp.eq.s32.totalorder %v2421_v23, %v1520_v54  ;;  %v750_v12 = vadd.f32 %v734_v15, %v694_v61  ;;  %v902_v26 = vsel %vm882_vm14, %v1567_v28, 0.0 }
  0x8b   :  { %v751_v47 = vadd.f32 %v735_v37, %v695_v2  ;;  %v903_v27 = vsel %vm883_vm15, %v1567_v28, 0.0  ;;  %v958_v48 = vsel %vm938_vm0, %v1570_v29, 0.0  ;;  %v959_v30 = vsel %vm939_vm1, %v1570_v29, 0.0 }
  0x8c   :  { %vm994_vm2 = vcmp.eq.s32.totalorder %v2420_v57, %v1523_v55  ;;  %vm995_vm3 = vcmp.eq.s32.totalorder %v2421_v23, %v1523_v55  ;;  %v806_v31 = vadd.f32 %v790_v45, %v750_v12  ;;  %vm156_vm4 = vcmp.eq.s32.totalorder %v2422_v52, %v1427_v0 }
  0x8d   :  { %v807_v35 = vadd.f32 %v791_v19, %v751_v47  ;;  %v1014_v44 = vsel %vm994_vm2, %v1573_v3, 0.0  ;;  %v1015_v56 = vsel %vm995_vm3, %v1573_v3, 0.0  ;;  %vm157_vm5 = vcmp.eq.s32.totalorder %v2423_v6, %v1427_v0 }
  0x8e   :  { %vm212_vm6 = vcmp.eq.s32.totalorder %v2422_v52, %v1436_v18  ;;  %vm213_vm7 = vcmp.eq.s32.totalorder %v2423_v6, %v1436_v18  ;;  %v862_v57 = vadd.f32 %v846_v58, %v806_v31  ;;  %v176_v46 = vsel %vm156_vm4, %v1528_v4, 0.0 }
  0x8f   :  { %v863_v23 = vadd.f32 %v847_v42, %v807_v35  ;;  %v177_v11 = vsel %vm157_vm5, %v1528_v4, 0.0  ;;  %v232_v41 = vsel %vm212_vm6, %v1531_v59, 0.0  ;;  %v233_v7 = vsel %vm213_vm7, %v1531_v59, 0.0 }
  0x90   :  { %vm268_vm8 = vcmp.eq.s32.totalorder %v2422_v52, %v1439_v20  ;;  %vm269_vm9 = vcmp.eq.s32.totalorder %v2423_v6, %v1439_v20  ;;  %v918_v33 = vadd.f32 %v902_v26, %v862_v57  ;;  %v248_v8 = vadd.f32 %v232_v41, %v176_v46 }
  0x91   :  { %v919_v5 = vadd.f32 %v903_v27, %v863_v23  ;;  %v249_v43 = vadd.f32 %v233_v7, %v177_v11  ;;  %v288_v1 = vsel %vm268_vm8, %v1534_v62, 0.0  ;;  %v289_v15 = vsel %vm269_vm9, %v1534_v62, 0.0 }
  0x92   :  { %vm324_vm10 = vcmp.eq.s32.totalorder %v2422_v52, %v1445_v32  ;;  %vm325_vm11 = vcmp.eq.s32.totalorder %v2423_v6, %v1445_v32  ;;  %v974_v37 = vadd.f32 %v958_v48, %v918_v33  ;;  %v304_v19 = vadd.f32 %v288_v1, %v248_v8 }
  0x93   :  { %v975_v45 = vadd.f32 %v959_v30, %v919_v5  ;;  %v305_v61 = vadd.f32 %v289_v15, %v249_v43  ;;  %v344_v2 = vsel %vm324_vm10, %v1537_v63, 0.0  ;;  %v345_v58 = vsel %vm325_vm11, %v1537_v63, 0.0 }
  0x94   :  { %vm380_vm12 = vcmp.eq.s32.totalorder %v2422_v52, %v1448_v34  ;;  %vm381_vm13 = vcmp.eq.s32.totalorder %v2423_v6, %v1448_v34  ;;  %v1030_v42 = vadd.f32 %v1014_v44, %v974_v37  ;;  %v360_v47 = vadd.f32 %v344_v2, %v304_v19 }
  0x95   :  { %v1031_v12 = vadd.f32 %v1015_v56, %v975_v45  ;;  %v361_v26 = vadd.f32 %v345_v58, %v305_v61  ;;  %v400_v27 = vsel %vm380_vm12, %v1540_v13, 0.0  ;;  %v401_v48 = vsel %vm381_vm13, %v1540_v13, 0.0 }
  0x96   :  { %vm436_vm14 = vcmp.eq.s32.totalorder %v2422_v52, %v1451_v36  ;;  %vm437_vm15 = vcmp.eq.s32.totalorder %v2423_v6, %v1451_v36  ;;  %v416_v31 = vadd.f32 %v400_v27, %v360_v47  ;;  %vm492_vm0 = vcmp.eq.s32.totalorder %v2422_v52, %v1454_v14 }
  0x97   :  { %v1225_v30 = vpack.c.bf16 %v1031_v12, %v1030_v42  ;;  %v417_v35 = vadd.f32 %v401_v48, %v361_v26  ;;  %v456_v57 = vsel %vm436_vm14, %v1543_v60, 0.0  ;;  %v457_v44 = vsel %vm437_vm15, %v1543_v60, 0.0 }
  0x98   :  { %vm493_vm1 = vcmp.eq.s32.totalorder %v2423_v6, %v1454_v14  ;;  %vm548_vm2 = vcmp.eq.s32.totalorder %v2422_v52, %v1457_v38  ;;  %v472_v56 = vadd.f32 %v456_v57, %v416_v31  ;;  %v512_v46 = vsel %vm492_vm0, %v1546_v9, 0.0 }
  0x99   :  { %1226 = vmatpush3.bf16.xpose.msra.mxu0 %v1225_v30  ;;  %v473_v23 = vadd.f32 %v457_v44, %v417_v35  ;;  %v513_v11 = vsel %vm493_vm1, %v1546_v9, 0.0  ;;  %vm549_vm3 = vcmp.eq.s32.totalorder %v2423_v6, %v1457_v38  ;;  %v568_v41 = vsel %vm548_vm2, %v1549_v16, 0.0 }
  0x9a   :  { %1227 = vmatprep.subr.bf16.mxu0 %v2419_v10  ;;  %vm604_vm4 = vcmp.eq.s32.totalorder %v2422_v52, %v1460_v39  ;;  %vm605_vm5 = vcmp.eq.s32.totalorder %v2423_v6, %v1460_v39  ;;  %v528_v7 = vadd.f32 %v512_v46, %v472_v56  ;;  %v569_v5 = vsel %vm549_vm3, %v1549_v16, 0.0 }
  0x9b   :  { %v529_v33 = vadd.f32 %v513_v11, %v473_v23  ;;  %v624_v8 = vsel %vm604_vm4, %v1552_v17, 0.0  ;;  %v625_v43 = vsel %vm605_vm5, %v1552_v17, 0.0  ;;  %vm660_vm6 = vcmp.eq.s32.totalorder %v2422_v52, %v1463_v40  ;;  %v2424_v23 = vld [vmem:[#allocation14_spill] sm:$0xff] }
  0x9c   :  { %vm661_vm7 = vcmp.eq.s32.totalorder %v2423_v6, %v1463_v40  ;;  %vm716_vm8 = vcmp.eq.s32.totalorder %v2422_v52, %v1502_v49  ;;  %v584_v1 = vadd.f32 %v568_v41, %v528_v7  ;;  %v680_v37 = vsel %vm660_vm6, %v1555_v21, 0.0 }
  0x9d   :  { %v585_v15 = vadd.f32 %v569_v5, %v529_v33  ;;  %v681_v45 = vsel %vm661_vm7, %v1555_v21, 0.0  ;;  %vm717_vm9 = vcmp.eq.s32.totalorder %v2423_v6, %v1502_v49  ;;  %v736_v19 = vsel %vm716_vm8, %v1558_v22, 0.0  ;;  %v2425_v33 = vld [vmem:[#allocation15_spill] sm:$0xff] }
  0x9e   :  { %vm772_vm10 = vcmp.eq.s32.totalorder %v2422_v52, %v1505_v50  ;;  %vm773_vm11 = vcmp.eq.s32.totalorder %v2423_v6, %v1505_v50  ;;  %v640_v61 = vadd.f32 %v624_v8, %v584_v1  ;;  %v737_v58 = vsel %vm717_vm9, %v1558_v22, 0.0 }
  0x9f   :  { %v641_v2 = vadd.f32 %v625_v43, %v585_v15  ;;  %v792_v42 = vsel %vm772_vm10, %v1561_v24, 0.0  ;;  %v793_v12 = vsel %vm773_vm11, %v1561_v24, 0.0  ;;  %vm828_vm12 = vcmp.eq.s32.totalorder %v2422_v52, %v1508_v51 }
  0xa0   :  { %vm829_vm13 = vcmp.eq.s32.totalorder %v2423_v6, %v1508_v51  ;;  %vm884_vm14 = vcmp.eq.s32.totalorder %v2422_v52, %v1517_v53  ;;  %v696_v47 = vadd.f32 %v680_v37, %v640_v61  ;;  %v848_v27 = vsel %vm828_vm12, %v1564_v25, 0.0 }
  0xa1   :  { %v697_v26 = vadd.f32 %v681_v45, %v641_v2  ;;  %v849_v48 = vsel %vm829_vm13, %v1564_v25, 0.0  ;;  %vm885_vm15 = vcmp.eq.s32.totalorder %v2423_v6, %v1517_v53  ;;  %v904_v30 = vsel %vm884_vm14, %v1567_v28, 0.0 }
  0xa2   :  { %vm940_vm0 = vcmp.eq.s32.totalorder %v2422_v52, %v1520_v54  ;;  %vm941_vm1 = vcmp.eq.s32.totalorder %v2423_v6, %v1520_v54  ;;  %v752_v31 = vadd.f32 %v736_v19, %v696_v47  ;;  %v905_v57 = vsel %vm885_vm15, %v1567_v28, 0.0 }
  0xa3   :  { %v753_v35 = vadd.f32 %v737_v58, %v697_v26  ;;  %v960_v44 = vsel %vm940_vm0, %v1570_v29, 0.0  ;;  %v961_v56 = vsel %vm941_vm1, %v1570_v29, 0.0  ;;  %vm996_vm2 = vcmp.eq.s32.totalorder %v2422_v52, %v1523_v55 }
  0xa4   :  { %vm997_vm3 = vcmp.eq.s32.totalorder %v2423_v6, %v1523_v55  ;;  %vm158_vm4 = vcmp.eq.s32.totalorder %v2424_v23, %v1427_v0  ;;  %v808_v46 = vadd.f32 %v792_v42, %v752_v31  ;;  %v1016_v41 = vsel %vm996_vm2, %v1573_v3, 0.0 }
  0xa5   :  { %v809_v11 = vadd.f32 %v793_v12, %v753_v35  ;;  %v1017_v7 = vsel %vm997_vm3, %v1573_v3, 0.0  ;;  %vm159_vm5 = vcmp.eq.s32.totalorder %v2425_v33, %v1427_v0  ;;  %v178_v5 = vsel %vm158_vm4, %v1528_v4, 0.0 }
  0xa6   :  { %vm214_vm6 = vcmp.eq.s32.totalorder %v2424_v23, %v1436_v18  ;;  %vm215_vm7 = vcmp.eq.s32.totalorder %v2425_v33, %v1436_v18  ;;  %v864_v52 = vadd.f32 %v848_v27, %v808_v46  ;;  %v179_v8 = vsel %vm159_vm5, %v1528_v4, 0.0 }
  0xa7   :  { %v865_v6 = vadd.f32 %v849_v48, %v809_v11  ;;  %v234_v43 = vsel %vm214_vm6, %v1531_v59, 0.0  ;;  %v235_v1 = vsel %vm215_vm7, %v1531_v59, 0.0  ;;  %vm270_vm8 = vcmp.eq.s32.totalorder %v2424_v23, %v1439_v20 }
  0xa8   :  { %v250_v15 = vadd.f32 %v234_v43, %v178_v5  ;;  %vm271_vm9 = vcmp.eq.s32.totalorder %v2425_v33, %v1439_v20  ;;  %v920_v37 = vadd.f32 %v904_v30, %v864_v52  ;;  %v251_v19 = vadd.f32 %v235_v1, %v179_v8 }
  0xa9   :  { %v921_v45 = vadd.f32 %v905_v57, %v865_v6  ;;  %v290_v61 = vsel %vm270_vm8, %v1534_v62, 0.0  ;;  %v291_v2 = vsel %vm271_vm9, %v1534_v62, 0.0  ;;  %vm326_vm10 = vcmp.eq.s32.totalorder %v2424_v23, %v1445_v32 }
  0xaa   :  { %v306_v58 = vadd.f32 %v290_v61, %v250_v15  ;;  %vm327_vm11 = vcmp.eq.s32.totalorder %v2425_v33, %v1445_v32  ;;  %v976_v42 = vadd.f32 %v960_v44, %v920_v37  ;;  %v307_v47 = vadd.f32 %v291_v2, %v251_v19 }
  0xab   :  { %v977_v12 = vadd.f32 %v961_v56, %v921_v45  ;;  %v346_v26 = vsel %vm326_vm10, %v1537_v63, 0.0  ;;  %v347_v27 = vsel %vm327_vm11, %v1537_v63, 0.0  ;;  %vm382_vm12 = vcmp.eq.s32.totalorder %v2424_v23, %v1448_v34 }
  0xac   :  { %v362_v48 = vadd.f32 %v346_v26, %v306_v58  ;;  %vm383_vm13 = vcmp.eq.s32.totalorder %v2425_v33, %v1448_v34  ;;  %v1032_v30 = vadd.f32 %v1016_v41, %v976_v42  ;;  %v363_v35 = vadd.f32 %v347_v27, %v307_v47 }
  0xad   :  { %v1033_v31 = vadd.f32 %v1017_v7, %v977_v12  ;;  %v402_v57 = vsel %vm382_vm12, %v1540_v13, 0.0  ;;  %v403_v44 = vsel %vm383_vm13, %v1540_v13, 0.0  ;;  %vm438_vm14 = vcmp.eq.s32.totalorder %v2424_v23, %v1451_v36 }
  0xae   :  { %v418_v56 = vadd.f32 %v402_v57, %v362_v48  ;;  %vm439_vm15 = vcmp.eq.s32.totalorder %v2425_v33, %v1451_v36  ;;  %v419_v11 = vadd.f32 %v403_v44, %v363_v35  ;;  %v458_v5 = vsel %vm438_vm14, %v1543_v60, 0.0 }
  0xaf   :  { %v1228_v46 = vpack.c.bf16 %v1033_v31, %v1032_v30  ;;  %v459_v52 = vsel %vm439_vm15, %v1543_v60, 0.0  ;;  %vm494_vm0 = vcmp.eq.s32.totalorder %v2424_v23, %v1454_v14  ;;  %vm495_vm1 = vcmp.eq.s32.totalorder %v2425_v33, %v1454_v14 }
  0xb0   :  { %v474_v41 = vadd.f32 %v458_v5, %v418_v56  ;;  %vm550_vm2 = vcmp.eq.s32.totalorder %v2424_v23, %v1457_v38  ;;  %v475_v7 = vadd.f32 %v459_v52, %v419_v11  ;;  %v514_v6 = vsel %vm494_vm0, %v1546_v9, 0.0 }
  0xb1   :  { %1229 = vmatpush3.bf16.xpose.msra.mxu0 %v1228_v46  ;;  %v515_v8 = vsel %vm495_vm1, %v1546_v9, 0.0  ;;  %vm551_vm3 = vcmp.eq.s32.totalorder %v2425_v33, %v1457_v38  ;;  %v570_v1 = vsel %vm550_vm2, %v1549_v16, 0.0  ;;  %vm606_vm4 = vcmp.eq.s32.totalorder %v2424_v23, %v1460_v39 }
  0xb2   :  { %1230 = vmatprep.subr.bf16.mxu0 %v2419_v10  ;;  %v530_v43 = vadd.f32 %v514_v6, %v474_v41  ;;  %v571_v15 = vsel %vm551_vm3, %v1549_v16, 0.0  ;;  %v531_v37 = vadd.f32 %v515_v8, %v475_v7  ;;  %vm607_vm5 = vcmp.eq.s32.totalorder %v2425_v33, %v1460_v39 }
  0xb3   :  { %v626_v45 = vsel %vm606_vm4, %v1552_v17, 0.0  ;;  %vm662_vm6 = vcmp.eq.s32.totalorder %v2424_v23, %v1463_v40  ;;  %v627_v61 = vsel %vm607_vm5, %v1552_v17, 0.0  ;;  %vm663_vm7 = vcmp.eq.s32.totalorder %v2425_v33, %v1463_v40 }
  0xb4   :  { %v586_v19 = vadd.f32 %v570_v1, %v530_v43  ;;  %v587_v2 = vadd.f32 %v571_v15, %v531_v37  ;;  %v682_v58 = vsel %vm662_vm6, %v1555_v21, 0.0  ;;  %vm718_vm8 = vcmp.eq.s32.totalorder %v2424_v23, %v1502_v49  ;;  %v2426_v43 = vld [vmem:[#allocation9_spill] sm:$0xff] }
  0xb5   :  { %vm719_vm9 = vcmp.eq.s32.totalorder %v2425_v33, %v1502_v49  ;;  %v683_v12 = vsel %vm663_vm7, %v1555_v21, 0.0  ;;  %v738_v47 = vsel %vm718_vm8, %v1558_v22, 0.0  ;;  %vm774_vm10 = vcmp.eq.s32.totalorder %v2424_v23, %v1505_v50 }
  0xb6   :  { %v642_v42 = vadd.f32 %v626_v45, %v586_v19  ;;  %v643_v26 = vadd.f32 %v627_v61, %v587_v2  ;;  %v739_v27 = vsel %vm719_vm9, %v1558_v22, 0.0  ;;  %vm775_vm11 = vcmp.eq.s32.totalorder %v2425_v33, %v1505_v50 }
  0xb7   :  { %vm830_vm12 = vcmp.eq.s32.totalorder %v2424_v23, %v1508_v51  ;;  %v794_v30 = vsel %vm774_vm10, %v1561_v24, 0.0  ;;  %v795_v31 = vsel %vm775_vm11, %v1561_v24, 0.0  ;;  %vm831_vm13 = vcmp.eq.s32.totalorder %v2425_v33, %v1508_v51 }
  0xb8   :  { %v698_v48 = vadd.f32 %v682_v58, %v642_v42  ;;  %v699_v35 = vadd.f32 %v683_v12, %v643_v26  ;;  %v850_v57 = vsel %vm830_vm12, %v1564_v25, 0.0  ;;  %vm886_vm14 = vcmp.eq.s32.totalorder %v2424_v23, %v1517_v53 }
  0xb9   :  { %vm887_vm15 = vcmp.eq.s32.totalorder %v2425_v33, %v1517_v53  ;;  %v851_v56 = vsel %vm831_vm13, %v1564_v25, 0.0  ;;  %v906_v46 = vsel %vm886_vm14, %v1567_v28, 0.0  ;;  %vm942_vm0 = vcmp.eq.s32.totalorder %v2424_v23, %v1520_v54 }
  0xba   :  { %v754_v44 = vadd.f32 %v738_v47, %v698_v48  ;;  %v755_v11 = vadd.f32 %v739_v27, %v699_v35  ;;  %v907_v5 = vsel %vm887_vm15, %v1567_v28, 0.0  ;;  %vm943_vm1 = vcmp.eq.s32.totalorder %v2425_v33, %v1520_v54 }
  0xbb   :  { %vm998_vm2 = vcmp.eq.s32.totalorder %v2424_v23, %v1523_v55  ;;  %v962_v41 = vsel %vm942_vm0, %v1570_v29, 0.0  ;;  %v963_v7 = vsel %vm943_vm1, %v1570_v29, 0.0  ;;  %vm999_vm3 = vcmp.eq.s32.totalorder %v2425_v33, %v1523_v55 }
  0xbc   :  { %v810_v52 = vadd.f32 %v794_v30, %v754_v44  ;;  %v811_v6 = vadd.f32 %v795_v31, %v755_v11  ;;  %v1018_v8 = vsel %vm998_vm2, %v1573_v3, 0.0  ;;  %v2176_v1 = vadd.s32 96, %v2426_v43 }
  0xbd   :  { %v2179_v15 = vadd.s32 104, %v2426_v43  ;;  %v1019_v23 = vsel %vm999_vm3, %v1573_v3, 0.0  ;;  %v2183_v45 = vadd.s32 112, %v2426_v43  ;;  %v2186_v19 = vadd.s32 120, %v2426_v43 }
  0xbe   :  { %v866_v37 = vadd.f32 %v850_v57, %v810_v52  ;;  %v867_v61 = vadd.f32 %v851_v56, %v811_v6  ;;  %vm160_vm4 = vcmp.eq.s32.totalorder %v2176_v1, %v1427_v0  ;;  %vm216_vm6 = vcmp.eq.s32.totalorder %v2176_v1, %v1436_v18 }
  0xbf   :  { %vm161_vm5 = vcmp.eq.s32.totalorder %v2179_v15, %v1427_v0  ;;  %v180_v2 = vsel %vm160_vm4, %v1528_v4, 0.0  ;;  %vm217_vm7 = vcmp.eq.s32.totalorder %v2179_v15, %v1436_v18  ;;  %v236_v12 = vsel %vm216_vm6, %v1531_v59, 0.0 }
  0xc0   :  { %v922_v33 = vadd.f32 %v906_v46, %v866_v37  ;;  %v181_v58 = vsel %vm161_vm5, %v1528_v4, 0.0  ;;  %v923_v42 = vadd.f32 %v907_v5, %v867_v61  ;;  %v237_v47 = vsel %vm217_vm7, %v1531_v59, 0.0 }
  0xc1   :  { %vm272_vm8 = vcmp.eq.s32.totalorder %v2176_v1, %v1439_v20  ;;  %v252_v27 = vadd.f32 %v236_v12, %v180_v2  ;;  %v253_v48 = vadd.f32 %v237_v47, %v181_v58  ;;  %vm273_vm9 = vcmp.eq.s32.totalorder %v2179_v15, %v1439_v20 }
  0xc2   :  { %v978_v26 = vadd.f32 %v962_v41, %v922_v33  ;;  %v979_v30 = vadd.f32 %v963_v7, %v923_v42  ;;  %v292_v31 = vsel %vm272_vm8, %v1534_v62, 0.0  ;;  %v293_v35 = vsel %vm273_vm9, %v1534_v62, 0.0 }
  0xc3   :  { %vm328_vm10 = vcmp.eq.s32.totalorder %v2176_v1, %v1445_v32  ;;  %v308_v44 = vadd.f32 %v292_v31, %v252_v27  ;;  %v309_v56 = vadd.f32 %v293_v35, %v253_v48  ;;  %vm329_vm11 = vcmp.eq.s32.totalorder %v2179_v15, %v1445_v32 }
  0xc4   :  { %v1034_v57 = vadd.f32 %v1018_v8, %v978_v26  ;;  %v1035_v46 = vadd.f32 %v1019_v23, %v979_v30  ;;  %v348_v11 = vsel %vm328_vm10, %v1537_v63, 0.0  ;;  %v349_v5 = vsel %vm329_vm11, %v1537_v63, 0.0 }
  0xc5   :  { %vm384_vm12 = vcmp.eq.s32.totalorder %v2176_v1, %v1448_v34  ;;  %v364_v52 = vadd.f32 %v348_v11, %v308_v44  ;;  %v365_v41 = vadd.f32 %v349_v5, %v309_v56  ;;  %vm385_vm13 = vcmp.eq.s32.totalorder %v2179_v15, %v1448_v34 }
  0xc6   :  { %v404_v7 = vsel %vm384_vm12, %v1540_v13, 0.0  ;;  %v1231_v6 = vpack.c.bf16 %v1035_v46, %v1034_v57  ;;  %v405_v8 = vsel %vm385_vm13, %v1540_v13, 0.0  ;;  %vm440_vm14 = vcmp.eq.s32.totalorder %v2176_v1, %v1451_v36 }
  0xc7   :  { %vm441_vm15 = vcmp.eq.s32.totalorder %v2179_v15, %v1451_v36  ;;  %v420_v43 = vadd.f32 %v404_v7, %v364_v52  ;;  %v421_v37 = vadd.f32 %v405_v8, %v365_v41  ;;  %v460_v23 = vsel %vm440_vm14, %v1543_v60, 0.0 }
  0xc8   :  { %v461_v61 = vsel %vm441_vm15, %v1543_v60, 0.0  ;;  %1232 = vmatpush3.bf16.xpose.msra.mxu0 %v1231_v6  ;;  %vm496_vm0 = vcmp.eq.s32.totalorder %v2176_v1, %v1454_v14  ;;  %vm497_vm1 = vcmp.eq.s32.totalorder %v2179_v15, %v1454_v14  ;;  %vm552_vm2 = vcmp.eq.s32.totalorder %v2176_v1, %v1457_v38 }
  0xc9   :  { %vm553_vm3 = vcmp.eq.s32.totalorder %v2179_v15, %v1457_v38  ;;  %1233 = vmatprep.subr.bf16.mxu0 %v2419_v10  ;;  %v476_v33 = vadd.f32 %v460_v23, %v420_v43  ;;  %v477_v2 = vadd.f32 %v461_v61, %v421_v37  ;;  %v516_v58 = vsel %vm496_vm0, %v1546_v9, 0.0 }
  0xca   :  { %v517_v42 = vsel %vm497_vm1, %v1546_v9, 0.0  ;;  %v572_v12 = vsel %vm552_vm2, %v1549_v16, 0.0  ;;  %v573_v47 = vsel %vm553_vm3, %v1549_v16, 0.0  ;;  %vm608_vm4 = vcmp.eq.s32.totalorder %v2176_v1, %v1460_v39 }
  0xcb   :  { %vm609_vm5 = vcmp.eq.s32.totalorder %v2179_v15, %v1460_v39  ;;  %v532_v26 = vadd.f32 %v516_v58, %v476_v33  ;;  %v533_v27 = vadd.f32 %v517_v42, %v477_v2  ;;  %v628_v48 = vsel %vm608_vm4, %v1552_v17, 0.0 }
  0xcc   :  { %v629_v30 = vsel %vm609_vm5, %v1552_v17, 0.0  ;;  %vm664_vm6 = vcmp.eq.s32.totalorder %v2176_v1, %v1463_v40  ;;  %vm665_vm7 = vcmp.eq.s32.totalorder %v2179_v15, %v1463_v40  ;;  %vm720_vm8 = vcmp.eq.s32.totalorder %v2176_v1, %v1502_v49 }
  0xcd   :  { %vm721_vm9 = vcmp.eq.s32.totalorder %v2179_v15, %v1502_v49  ;;  %v588_v31 = vadd.f32 %v572_v12, %v532_v26  ;;  %v589_v35 = vadd.f32 %v573_v47, %v533_v27  ;;  %v684_v57 = vsel %vm664_vm6, %v1555_v21, 0.0 }
  0xce   :  { %v685_v44 = vsel %vm665_vm7, %v1555_v21, 0.0  ;;  %v740_v56 = vsel %vm720_vm8, %v1558_v22, 0.0  ;;  %v741_v46 = vsel %vm721_vm9, %v1558_v22, 0.0  ;;  %vm776_vm10 = vcmp.eq.s32.totalorder %v2176_v1, %v1505_v50 }
  0xcf   :  { %vm777_vm11 = vcmp.eq.s32.totalorder %v2179_v15, %v1505_v50  ;;  %v644_v11 = vadd.f32 %v628_v48, %v588_v31  ;;  %v645_v5 = vadd.f32 %v629_v30, %v589_v35  ;;  %v796_v52 = vsel %vm776_vm10, %v1561_v24, 0.0 }
  0xd0   :  { %v797_v41 = vsel %vm777_vm11, %v1561_v24, 0.0  ;;  %vm832_vm12 = vcmp.eq.s32.totalorder %v2176_v1, %v1508_v51  ;;  %vm833_vm13 = vcmp.eq.s32.totalorder %v2179_v15, %v1508_v51  ;;  %vm888_vm14 = vcmp.eq.s32.totalorder %v2176_v1, %v1517_v53 }
  0xd1   :  { %vm889_vm15 = vcmp.eq.s32.totalorder %v2179_v15, %v1517_v53  ;;  %v700_v7 = vadd.f32 %v684_v57, %v644_v11  ;;  %v701_v6 = vadd.f32 %v685_v44, %v645_v5  ;;  %v852_v8 = vsel %vm832_vm12, %v1564_v25, 0.0 }
  0xd2   :  { %v853_v43 = vsel %vm833_vm13, %v1564_v25, 0.0  ;;  %v908_v37 = vsel %vm888_vm14, %v1567_v28, 0.0  ;;  %v909_v23 = vsel %vm889_vm15, %v1567_v28, 0.0  ;;  %vm944_vm0 = vcmp.eq.s32.totalorder %v2176_v1, %v1520_v54 }
  0xd3   :  { %vm945_vm1 = vcmp.eq.s32.totalorder %v2179_v15, %v1520_v54  ;;  %v756_v61 = vadd.f32 %v740_v56, %v700_v7  ;;  %v757_v33 = vadd.f32 %v741_v46, %v701_v6  ;;  %v964_v2 = vsel %vm944_vm0, %v1570_v29, 0.0 }
  0xd4   :  { %v965_v58 = vsel %vm945_vm1, %v1570_v29, 0.0  ;;  %vm1000_vm2 = vcmp.eq.s32.totalorder %v2176_v1, %v1523_v55  ;;  %vm1001_vm3 = vcmp.eq.s32.totalorder %v2179_v15, %v1523_v55  ;;  %vm162_vm4 = vcmp.eq.s32.totalorder %v2183_v45, %v1427_v0 }
  0xd5   :  { %vm163_vm5 = vcmp.eq.s32.totalorder %v2186_v19, %v1427_v0  ;;  %v812_v42 = vadd.f32 %v796_v52, %v756_v61  ;;  %v813_v12 = vadd.f32 %v797_v41, %v757_v33  ;;  %v1020_v47 = vsel %vm1000_vm2, %v1573_v3, 0.0 }
  0xd6   :  { %v1021_v26 = vsel %vm1001_vm3, %v1573_v3, 0.0  ;;  %v182_v27 = vsel %vm162_vm4, %v1528_v4, 0.0  ;;  %v183_v48 = vsel %vm163_vm5, %v1528_v4, 0.0  ;;  %vm218_vm6 = vcmp.eq.s32.totalorder %v2183_v45, %v1436_v18 }
  0xd7   :  { %vm219_vm7 = vcmp.eq.s32.totalorder %v2186_v19, %v1436_v18  ;;  %v868_v1 = vadd.f32 %v852_v8, %v812_v42  ;;  %v869_v15 = vadd.f32 %v853_v43, %v813_v12  ;;  %v238_v0 = vsel %vm218_vm6, %v1531_v59, 0.0 }
  0xd8   :  { %v239_v30 = vsel %vm219_vm7, %v1531_v59, 0.0  ;;  %v254_v31 = vadd.f32 %v238_v0, %v182_v27  ;;  %vm274_vm8 = vcmp.eq.s32.totalorder %v2183_v45, %v1439_v20  ;;  %vm275_vm9 = vcmp.eq.s32.totalorder %v2186_v19, %v1439_v20 }
  0xd9   :  { %v255_v35 = vadd.f32 %v239_v30, %v183_v48  ;;  %v924_v4 = vadd.f32 %v908_v37, %v868_v1  ;;  %v925_v57 = vadd.f32 %v909_v23, %v869_v15  ;;  %v294_v44 = vsel %vm274_vm8, %v1534_v62, 0.0 }
  0xda   :  { %v295_v18 = vsel %vm275_vm9, %v1534_v62, 0.0  ;;  %v310_v56 = vadd.f32 %v294_v44, %v254_v31  ;;  %vm330_vm10 = vcmp.eq.s32.totalorder %v2183_v45, %v1445_v32  ;;  %vm331_vm11 = vcmp.eq.s32.totalorder %v2186_v19, %v1445_v32 }
  0xdb   :  { %v311_v46 = vadd.f32 %v295_v18, %v255_v35  ;;  %v980_v59 = vadd.f32 %v964_v2, %v924_v4  ;;  %v981_v11 = vadd.f32 %v965_v58, %v925_v57  ;;  %v350_v5 = vsel %vm330_vm10, %v1537_v63, 0.0 }
  0xdc   :  { %v351_v20 = vsel %vm331_vm11, %v1537_v63, 0.0  ;;  %v366_v52 = vadd.f32 %v350_v5, %v310_v56  ;;  %vm386_vm12 = vcmp.eq.s32.totalorder %v2183_v45, %v1448_v34  ;;  %vm387_vm13 = vcmp.eq.s32.totalorder %v2186_v19, %v1448_v34 }
  0xdd   :  { %v367_v41 = vadd.f32 %v351_v20, %v311_v46  ;;  %v1036_v62 = vadd.f32 %v1020_v47, %v980_v59  ;;  %v1037_v7 = vadd.f32 %v1021_v26, %v981_v11  ;;  %v406_v6 = vsel %vm386_vm12, %v1540_v13, 0.0 }
  0xde   :  { %v407_v32 = vsel %vm387_vm13, %v1540_v13, 0.0  ;;  %v422_v8 = vadd.f32 %v406_v6, %v366_v52  ;;  %vm442_vm14 = vcmp.eq.s32.totalorder %v2183_v45, %v1451_v36  ;;  %vm443_vm15 = vcmp.eq.s32.totalorder %v2186_v19, %v1451_v36 }
  0xdf   :  { %v423_v43 = vadd.f32 %v407_v32, %v367_v41  ;;  %v1234_v63 = vpack.c.bf16 %v1037_v7, %v1036_v62  ;;  %v462_v37 = vsel %vm442_vm14, %v1543_v60, 0.0  ;;  %v463_v23 = vsel %vm443_vm15, %v1543_v60, 0.0 }
  0xe0   :  { %vm498_vm0 = vcmp.eq.s32.totalorder %v2183_v45, %v1454_v14  ;;  %v478_v34 = vadd.f32 %v462_v37, %v422_v8  ;;  %vm499_vm1 = vcmp.eq.s32.totalorder %v2186_v19, %v1454_v14  ;;  %vm554_vm2 = vcmp.eq.s32.totalorder %v2183_v45, %v1457_v38 }
  0xe1   :  { %v479_v61 = vadd.f32 %v463_v23, %v423_v43  ;;  %v518_v13 = vsel %vm498_vm0, %v1546_v9, 0.0  ;;  %1235 = vmatpush3.bf16.xpose.msra.mxu0 %v1234_v63  ;;  %v519_v33 = vsel %vm499_vm1, %v1546_v9, 0.0  ;;  %vm555_vm3 = vcmp.eq.s32.totalorder %v2186_v19, %v1457_v38 }
  0xe2   :  { %vm610_vm4 = vcmp.eq.s32.totalorder %v2183_v45, %v1460_v39  ;;  %1236 = vmatprep.subr.bf16.mxu0 %v2419_v10  ;;  %v534_v36 = vadd.f32 %v518_v13, %v478_v34  ;;  %v574_v14 = vsel %vm554_vm2, %v1549_v16, 0.0  ;;  %v575_v2 = vsel %vm555_vm3, %v1549_v16, 0.0 }
  0xe3   :  { %v535_v60 = vadd.f32 %v519_v33, %v479_v61  ;;  %vm611_vm5 = vcmp.eq.s32.totalorder %v2186_v19, %v1460_v39  ;;  %v630_v9 = vsel %vm610_vm4, %v1552_v17, 0.0  ;;  %vm666_vm6 = vcmp.eq.s32.totalorder %v2183_v45, %v1463_v40 }
  0xe4   :  { %vm667_vm7 = vcmp.eq.s32.totalorder %v2186_v19, %v1463_v40  ;;  %v590_v38 = vadd.f32 %v574_v14, %v534_v36  ;;  %v631_v10 = vsel %vm611_vm5, %v1552_v17, 0.0  ;;  %v686_v42 = vsel %vm666_vm6, %v1555_v21, 0.0 }
  0xe5   :  { %v591_v58 = vadd.f32 %v575_v2, %v535_v60  ;;  %v687_v12 = vsel %vm667_vm7, %v1555_v21, 0.0  ;;  %vm722_vm8 = vcmp.eq.s32.totalorder %v2183_v45, %v1502_v49  ;;  %vm723_vm9 = vcmp.eq.s32.totalorder %v2186_v19, %v1502_v49 }
  0xe6   :  { %v646_v39 = vadd.f32 %v630_v9, %v590_v38  ;;  %vm778_vm10 = vcmp.eq.s32.totalorder %v2183_v45, %v1505_v50  ;;  %v742_v40 = vsel %vm722_vm8, %v1558_v22, 0.0  ;;  %v743_v47 = vsel %vm723_vm9, %v1558_v22, 0.0 }
  0xe7   :  { %v647_v16 = vadd.f32 %v631_v10, %v591_v58  ;;  %vm779_vm11 = vcmp.eq.s32.totalorder %v2186_v19, %v1505_v50  ;;  %vm834_vm12 = vcmp.eq.s32.totalorder %v2183_v45, %v1508_v51  ;;  %vm835_vm13 = vcmp.eq.s32.totalorder %v2186_v19, %v1508_v51 }
  0xe8   :  { %v702_v17 = vadd.f32 %v686_v42, %v646_v39  ;;  %v798_v49 = vsel %vm778_vm10, %v1561_v24, 0.0  ;;  %v799_v26 = vsel %vm779_vm11, %v1561_v24, 0.0  ;;  %vm890_vm14 = vcmp.eq.s32.totalorder %v2183_v45, %v1517_v53 }
  0xe9   :  { %v703_v21 = vadd.f32 %v687_v12, %v647_v16  ;;  %vm891_vm15 = vcmp.eq.s32.totalorder %v2186_v19, %v1517_v53  ;;  %v854_v50 = vsel %vm834_vm12, %v1564_v25, 0.0  ;;  %v855_v22 = vsel %vm835_vm13, %v1564_v25, 0.0 }
  0xea   :  { %v758_v27 = vadd.f32 %v742_v40, %v702_v17  ;;  %vm946_vm0 = vcmp.eq.s32.totalorder %v2183_v45, %v1520_v54  ;;  %vm947_vm1 = vcmp.eq.s32.totalorder %v2186_v19, %v1520_v54  ;;  %v910_v51 = vsel %vm890_vm14, %v1567_v28, 0.0 }
  0xeb   :  { %v759_v48 = vadd.f32 %v743_v47, %v703_v21  ;;  %v911_v24 = vsel %vm891_vm15, %v1567_v28, 0.0  ;;  %vm1002_vm2 = vcmp.eq.s32.totalorder %v2183_v45, %v1523_v55  ;;  %vm1003_vm3 = vcmp.eq.s32.totalorder %v2186_v19, %v1523_v55 }
  0xec   :  { %v814_v1 = vadd.f32 %v798_v49, %v758_v27  ;;  %vm1311_vm4 = vmmov 0   ;;  %v1312_v53 = vmov 0.0   ;;  %v966_v25 = vsel %vm946_vm0, %v1570_v29, 0.0 }
  0xed   :  { %v815_v15 = vadd.f32 %v799_v26, %v759_v48  ;;  %1212 = vmatprep.mubr.msk.f32.mxu0 %vm1311_vm4, %v1312_v53  ;;  %v967_v31 = vsel %vm947_vm1, %v1570_v29, 0.0  ;;  %v1022_v4 = vsel %vm1002_vm2, %v1573_v3, 0.0  ;;  %v1023_v28 = vsel %vm1003_vm3, %v1573_v3, 0.0 }
  0xee   :  { %v870_v0 = vadd.f32 %v854_v50, %v814_v1  ;;  %v1313_v55 = vmov 1.0  }
  0xef   :  { %v871_v30 = vadd.f32 %v855_v22, %v815_v15 }
  0xf0   :  { %v926_v54 = vadd.f32 %v910_v51, %v870_v0 }
  0xf1   :  { %v927_v35 = vadd.f32 %v911_v24, %v871_v30 }
  0xf2   :  { %v982_v57 = vadd.f32 %v966_v25, %v926_v54 }
  0xf3   :  { %v983_v44 = vadd.f32 %v967_v31, %v927_v35 }
  0xf4   :  { %v1038_v18 = vadd.f32 %v1022_v4, %v982_v57 }
  0xf5   :  { %v1039_v45 = vadd.f32 %v1023_v28, %v983_v44 }
  0xf7   :  { %v1237_v56 = vpack.c.bf16 %v1039_v45, %v1038_v18 }
  0xf9   :  { %1238 = vmatpush3.bf16.xpose.msra.mxu0 %v1237_v56 }
 0x100   :  { %1213 = vmatmul.mubr.f32.vlgmr.msra.gmra.mrb[0].mxu0 %v1313_v55 }
 0x1d3   :  { %v1141_v19 = vpop.f32.mrb[0].mxu0 }
 0x1d4   :  { %1145 = vst [vmem:[#allocation6] sm:$0x1] %v1141_v19  ;;  %v1214_v29 = vpop.f32.mrb[1].mxu0 }
 0x1d5   :  { %1292 = shalt.err (!%p1289_p12)
}
 0x1d6   :  { %s1293_s25 = scalar_lea.hbm %s2395_s1, 16 }
 0x1d7   :  { %p1294_p13 = scmp.ne.s32.totalorder %s2395_s1, %s1293_s25  ;;  %p1297_p0 = scmp.lt.u32.totalorder %s1293_s25, %s2395_s1 }
 0x1d9   :  { %p1299_p1 = pnand %p1297_p0, %p1294_p13 }
 0x1db   :  { %1302 = shalt.err (!%p1299_p1)
}
 0x1dc   :  { %1155 = dma.vmem_to_hbm [thread:$0]  %s1153_s20, 16, %s2395_s1, [#allocation5]  }
 0x1dd   :  { %1305 = dma.done.wait [#allocation5], 16  }
 0x1de   :  { %1306 = vsyncadd [#allocation5], 4294967280 }
 0x1df   :  { %1159 = vsyncpa [#allocation4], 1 }
 0x1e0   :  { %1160 = vsyncpa [#allocation5], 1 }

</bundles_post_ra>
